<compile_context>
chip_gen: v7x
topology: tpu7x:2x2x1
jax: 0.10.0
libtpu: 0.0.40
codegen_flags: <defaults>
</compile_context>

<pallas_src>
import functools

import jax
import jax.numpy as jnp
from jax.experimental import pallas as pl
from jax.experimental.pallas import tpu as pltpu

IN_DIM = 2500
HID_DIM = 256
OUT_DIM = 2
DROP_P = 0.2

K_PAD = 2560      # 2500 rounded up to a multiple of 128
OUT_PAD = 128     # lane-dense output tile; wrapper slices [:, :OUT_DIM]

# Compat shim for older/newer pltpu naming.
_CompilerParams = getattr(pltpu, "CompilerParams", None) or getattr(
    pltpu, "TPUCompilerParams")


def _round_up(n, m):
    return ((n + m - 1) // m) * m


def _mlp_kernel(*refs, training):
    if training:
        x_ref, w1_ref, b1_ref, w2_ref, b2_ref, mask_ref, out_ref = refs
    else:
        x_ref, w1_ref, b1_ref, w2_ref, b2_ref, out_ref = refs
        mask_ref = None

    # ---- fc1 (bf16 operands, f32 accumulation on the MXU) + bias + ReLU ----
    h = jnp.dot(x_ref[...], w1_ref[...], preferred_element_type=jnp.float32)
    h = jnp.maximum(h + b1_ref[...], 0.0)

    # ---- Dropout(p): mask carries {0, 1/(1-p)} so a single VPU multiply suffices ----
    if training:
        h = h * mask_ref[...]

    # ---- fc2 on the zero-padded (256, 128) weight tile -> lane-dense logits ----
    logits = jnp.dot(h, w2_ref[...], preferred_element_type=jnp.float32)
    logits = logits + b2_ref[...]

    # ---- log_softmax along dim=1; padded lanes masked out of max/sum ----
    lane = jax.lax.broadcasted_iota(jnp.int32, logits.shape, 1)
    logits = jnp.where(lane < OUT_DIM, logits, jnp.float32(-1e30))
    m = jnp.max(logits, axis=1, keepdims=True)
    s = logits - m
    lse = jnp.log(jnp.sum(jnp.exp(s), axis=1, keepdims=True))
    out_ref[...] = s - lse


def mlp_forward(x, w1, b1, w2, b2, *, drop_mask=None, block_b=512):
    """x: (B, 2500) f32 -> (B, 2) f32 log-probabilities.

    drop_mask: optional (B, 256) array with entries in {0, 1/(1-p)} (training mode).
               None -> inference mode (dropout is identity), matching model.eval().
    block_b:   batch tile size cap; 512 keeps double-buffered x tiles + resident
               weights well inside scoped VMEM on v5e / v6e / v7x.
    """
    B = x.shape[0]
    training = drop_mask is not None

    tb = min(block_b, _round_up(B, 8))        # sublane-aligned batch tile
    b_pad = _round_up(B, tb)
    grid = (b_pad // tb,)

    # Pad K -> 2560 and batch -> multiple of tb; cast the two large operands to bf16.
    x_p = (jnp.zeros((b_pad, K_PAD), jnp.float32)
           .at[:B, :IN_DIM].set(x).astype(jnp.bfloat16))
    w1_p = (jnp.zeros((K_PAD, HID_DIM), jnp.float32)
            .at[:IN_DIM, :].set(w1).astype(jnp.bfloat16))
    b1_p = b1.reshape(1, HID_DIM).astype(jnp.float32)
    w2_p = jnp.zeros((HID_DIM, OUT_PAD), jnp.float32).at[:, :OUT_DIM].set(w2)
    b2_p = (jnp.zeros((1, OUT_PAD), jnp.float32)
            .at[:, :OUT_DIM].set(b2.reshape(1, OUT_DIM)))

    in_specs = [
        pl.BlockSpec((tb, K_PAD), lambda i: (i, 0)),         # x: streamed per row tile
        pl.BlockSpec((K_PAD, HID_DIM), lambda i: (0, 0)),    # w1: VMEM-resident
        pl.BlockSpec((1, HID_DIM), lambda i: (0, 0)),        # b1
        pl.BlockSpec((HID_DIM, OUT_PAD), lambda i: (0, 0)),  # w2 (lane-padded)
        pl.BlockSpec((1, OUT_PAD), lambda i: (0, 0)),        # b2 (lane-padded)
    ]
    args = [x_p, w1_p, b1_p, w2_p, b2_p]
    if training:
        mask_p = (jnp.zeros((b_pad, HID_DIM), jnp.float32)
                  .at[:B, :].set(drop_mask.astype(jnp.float32)))
        in_specs.append(pl.BlockSpec((tb, HID_DIM), lambda i: (i, 0)))
        args.append(mask_p)

    out = pl.pallas_call(
        functools.partial(_mlp_kernel, training=training),
        out_shape=jax.ShapeDtypeStruct((b_pad, OUT_PAD), jnp.float32),
        grid=grid,
        in_specs=in_specs,
        out_specs=pl.BlockSpec((tb, OUT_PAD), lambda i: (i, 0)),
        compiler_params=_CompilerParams(dimension_semantics=("parallel",)),
    )(*args)
    return out[:B, :OUT_DIM]


def init_params(key):
    """Deterministic init mimicking PyTorch nn.Linear default (uniform +/- 1/sqrt(fan_in))."""
    k1, k2, k3, k4 = jax.random.split(key, 4)
    bound1 = 1.0 / jnp.sqrt(jnp.float32(IN_DIM))
    bound2 = 1.0 / jnp.sqrt(jnp.float32(HID_DIM))
    w1 = jax.random.uniform(k1, (IN_DIM, HID_DIM), jnp.float32, -bound1, bound1)
    b1 = jax.random.uniform(k2, (1, HID_DIM), jnp.float32, -bound1, bound1)
    w2 = jax.random.uniform(k3, (HID_DIM, OUT_DIM), jnp.float32, -bound2, bound2)
    b2 = jax.random.uniform(k4, (1, OUT_DIM), jnp.float32, -bound2, bound2)
    return w1, b1, w2, b2


def _reference(x, w1, b1, w2, b2, drop_mask=None):
    # Quantize the same operands the kernel streams in bf16, then compute in f32.
    xq = x.astype(jnp.bfloat16).astype(jnp.float32)
    w1q = w1.astype(jnp.bfloat16).astype(jnp.float32)
    h = jnp.maximum(xq @ w1q + b1, 0.0)
    if drop_mask is not None:
        h = h * drop_mask
    return jax.nn.log_softmax(h @ w2 + b2, axis=1)


if __name__ == "__main__":
    key = jax.random.PRNGKey(0)
    kx, kp, kd, kx2 = jax.random.split(key, 4)

    B = 8
    x = jax.random.normal(kx, (B, IN_DIM), jnp.float32)
    w1, b1, w2, b2 = init_params(kp)

    # --- Inference mode (dropout == identity, i.e. model.eval()) ---
    out = jax.block_until_ready(mlp_forward(x, w1, b1, w2, b2))
    ref = _reference(x, w1, b1, w2, b2)
    assert out.shape == (B, OUT_DIM)
    assert jnp.allclose(out, ref, atol=2e-3, rtol=2e-3)

    # --- Training mode with a deterministic host-side dropout mask ---
    keep = jax.random.bernoulli(kd, 1.0 - DROP_P, (B, HID_DIM))
    drop_mask = keep.astype(jnp.float32) / jnp.float32(1.0 - DROP_P)
    out_tr = jax.block_until_ready(
        mlp_forward(x, w1, b1, w2, b2, drop_mask=drop_mask))
    ref_tr = _reference(x, w1, b1, w2, b2, drop_mask=drop_mask)
    assert out_tr.shape == (B, OUT_DIM)
    assert jnp.allclose(out_tr, ref_tr, atol=2e-3, rtol=2e-3)

    # --- Multi-tile grid (batch streamed in 16-row tiles over a 4-step grid) ---
    B2 = 64
    x2 = jax.random.normal(kx2, (B2, IN_DIM), jnp.float32)
    out2 = jax.block_until_ready(mlp_forward(x2, w1, b1, w2, b2, block_b=16))
    ref2 = _reference(x2, w1, b1, w2, b2)
    assert out2.shape == (B2, OUT_DIM)
    assert jnp.allclose(out2, ref2, atol=2e-3, rtol=2e-3)

    print("KERNEL_OK")
</pallas_src>

<mosaic_0001>
module attributes {stable_mosaic.version = 11 : i64} {
  func.func @_mlp_kernel(%arg0: i32, %arg1: memref<8x2560xbf16, #tpu.memory_space<vmem>>, %arg2: memref<2560x256xbf16, #tpu.memory_space<vmem>>, %arg3: memref<1x256xf32, #tpu.memory_space<vmem>>, %arg4: memref<256x128xf32, #tpu.memory_space<vmem>>, %arg5: memref<1x128xf32, #tpu.memory_space<vmem>>, %arg6: memref<8x128xf32, #tpu.memory_space<vmem>>) attributes {dimension_semantics = [#tpu.dimension_semantics<parallel>], iteration_bounds = array<i64: 1>, scalar_prefetch = 0 : i64, scratch_operands = 0 : i64, tpu.core_type = #tpu.core_type<tc>, window_params = [{transform_indices = @transform_0, window_bounds = array<i64: 8, 2560>}, {pipeline_mode = #tpu.pipeline_mode<synchronous>, transform_indices = @transform_1, window_bounds = array<i64: 2560, 256>}, {pipeline_mode = #tpu.pipeline_mode<synchronous>, transform_indices = @transform_2, window_bounds = array<i64: 1, 256>}, {pipeline_mode = #tpu.pipeline_mode<synchronous>, transform_indices = @transform_3, window_bounds = array<i64: 256, 128>}, {pipeline_mode = #tpu.pipeline_mode<synchronous>, transform_indices = @transform_4, window_bounds = array<i64: 1, 128>}, {transform_indices = @transform_5, window_bounds = array<i64: 8, 128>}]} {
    %c0 = arith.constant 0 : index
    %c0_0 = arith.constant 0 : index
    %0 = vector.load %arg1[%c0, %c0_0] : memref<8x2560xbf16, #tpu.memory_space<vmem>>, vector<8x2560xbf16>
    %c0_1 = arith.constant 0 : index
    %c0_2 = arith.constant 0 : index
    %1 = vector.load %arg2[%c0_1, %c0_2] : memref<2560x256xbf16, #tpu.memory_space<vmem>>, vector<2560x256xbf16>
    %cst = arith.constant dense<0.000000e+00> : vector<8x256xf32>
    %2 = tpu.matmul %0, %1, %cst {dimension_numbers = #tpu.dot_dimension_numbers<[1], [0], [0], [1], [0, 0, 1, 1], [], []>} : vector<8x2560xbf16>, vector<2560x256xbf16>, vector<8x256xf32> -> vector<8x256xf32>
    %c0_3 = arith.constant 0 : index
    %c0_4 = arith.constant 0 : index
    %3 = vector.load %arg3[%c0_3, %c0_4] : memref<1x256xf32, #tpu.memory_space<vmem>>, vector<1x256xf32>
    %4 = vector.broadcast %3 : vector<1x256xf32> to vector<8x256xf32>
    %5 = arith.addf %2, %4 : vector<8x256xf32>
    %cst_5 = arith.constant 0.000000e+00 : f32
    %6 = vector.broadcast %cst_5 : f32 to vector<8x256xf32>
    %7 = arith.maximumf %5, %6 : vector<8x256xf32>
    %c0_6 = arith.constant 0 : index
    %c0_7 = arith.constant 0 : index
    %8 = vector.load %arg4[%c0_6, %c0_7] : memref<256x128xf32, #tpu.memory_space<vmem>>, vector<256x128xf32>
    %cst_8 = arith.constant dense<0.000000e+00> : vector<8x128xf32>
    %9 = tpu.matmul %7, %8, %cst_8 {dimension_numbers = #tpu.dot_dimension_numbers<[1], [0], [0], [1], [0, 0, 1, 1], [], []>} : vector<8x256xf32>, vector<256x128xf32>, vector<8x128xf32> -> vector<8x128xf32>
    %c0_9 = arith.constant 0 : index
    %c0_10 = arith.constant 0 : index
    %10 = vector.load %arg5[%c0_9, %c0_10] : memref<1x128xf32, #tpu.memory_space<vmem>>, vector<1x128xf32>
    %11 = vector.broadcast %10 : vector<1x128xf32> to vector<8x128xf32>
    %12 = arith.addf %9, %11 : vector<8x128xf32>
    %13 = tpu.iota {dimensions = array<i32: 1>} : vector<8x128xi32>
    %c2_i32 = arith.constant 2 : i32
    %14 = vector.broadcast %c2_i32 : i32 to vector<8x128xi32>
    %15 = arith.cmpi slt, %13, %14 : vector<8x128xi32>
    %cst_11 = arith.constant -1.000000e+30 : f32
    %16 = vector.broadcast %cst_11 : f32 to vector<8x128xf32>
    %17 = arith.select %15, %12, %16 : vector<8x128xi1>, vector<8x128xf32>
    %cst_12 = arith.constant dense<0xFF800000> : vector<8xf32>
    %18 = vector.multi_reduction <maximumf>, %17, %cst_12 [1] : vector<8x128xf32> to vector<8xf32>
    %19 = vector.shape_cast %18 : vector<8xf32> to vector<8x1xf32>
    %20 = vector.broadcast %19 : vector<8x1xf32> to vector<8x128xf32>
    %21 = arith.subf %17, %20 : vector<8x128xf32>
    %22 = math.exp %21 : vector<8x128xf32>
    %cst_13 = arith.constant dense<0.000000e+00> : vector<8xf32>
    %23 = vector.multi_reduction <add>, %22, %cst_13 [1] : vector<8x128xf32> to vector<8xf32>
    %24 = vector.shape_cast %23 : vector<8xf32> to vector<8x1xf32>
    %25 = math.log %24 : vector<8x1xf32>
    %26 = vector.broadcast %25 : vector<8x1xf32> to vector<8x128xf32>
    %27 = arith.subf %21, %26 : vector<8x128xf32>
    %c0_14 = arith.constant 0 : index
    %c0_15 = arith.constant 0 : index
    %28 = vector.load %arg6[%c0_14, %c0_15] : memref<8x128xf32, #tpu.memory_space<vmem>>, vector<8x128xf32>
    tpu.vector_store %arg6[%c0_14, %c0_15], %27 {strides = array<i32>} : memref<8x128xf32, #tpu.memory_space<vmem>>, vector<8x128xf32>,
    return
  }
  func.func @transform_0(%arg0: i32) -> (i32, i32) {
    %c0_i32 = arith.constant 0 : i32
    %c0_i32_0 = arith.constant 0 : i32
    return %arg0, %c0_i32 : i32, i32
  }
  func.func @transform_1(%arg0: i32) -> (i32, i32) {
    %c0_i32 = arith.constant 0 : i32
    %c0_i32_0 = arith.constant 0 : i32
    %c0_i32_1 = arith.constant 0 : i32
    return %c0_i32, %c0_i32_0 : i32, i32
  }
  func.func @transform_2(%arg0: i32) -> (i32, i32) {
    %c0_i32 = arith.constant 0 : i32
    %c0_i32_0 = arith.constant 0 : i32
    %c0_i32_1 = arith.constant 0 : i32
    return %c0_i32, %c0_i32_0 : i32, i32
  }
  func.func @transform_3(%arg0: i32) -> (i32, i32) {
    %c0_i32 = arith.constant 0 : i32
    %c0_i32_0 = arith.constant 0 : i32
    %c0_i32_1 = arith.constant 0 : i32
    return %c0_i32, %c0_i32_0 : i32, i32
  }
  func.func @transform_4(%arg0: i32) -> (i32, i32) {
    %c0_i32 = arith.constant 0 : i32
    %c0_i32_0 = arith.constant 0 : i32
    %c0_i32_1 = arith.constant 0 : i32
    return %c0_i32, %c0_i32_0 : i32, i32
  }
  func.func @transform_5(%arg0: i32) -> (i32, i32) {
    %c0_i32 = arith.constant 0 : i32
    %c0_i32_0 = arith.constant 0 : i32
    return %arg0, %c0_i32 : i32, i32
  }
}

</mosaic_0001>

<bundles_post_ra>
// kernel: tpu_custom_call.1
= control target key start
LH: loop header
LB: loop body
LE: loop exit
PB: predicated region body
PF: predicated region fallthrough
CT: control target
= control target key end

     0   :  { %10 = vsyncpa [#allocation3], 0  ;;  %s3902_s0 = inlined_call_operand.hbm [shape: bf16[8,2560], index: 0, kind: input, shape index: {}]   ;;  %s3903_s1 = inlined_call_operand.hbm [shape: bf16[2560,256], index: 1, kind: input, shape index: {}]   ;;  %s3904_s2 = inlined_call_operand.hbm [shape: f32[1,256], index: 2, kind: input, shape index: {}]   ;;  %s3905_s3 = inlined_call_operand.hbm [shape: f32[256,128], index: 3, kind: input, shape index: {}]   ;;  %s3906_s4 = inlined_call_operand.hbm [shape: f32[1,128], index: 4, kind: input, shape index: {}]   ;;  %s3907_s5 = inlined_call_operand.hbm [shape: f32[8,128], index: 5, kind: output, shape index: {}]  }
   0x1   :  { %11 = vsyncpa [#allocation6], 0 }
   0x2   :  { %12 = vsyncpa [#allocation9], 0 }
   0x3   :  { %13 = vsyncpa [#allocation4], 0  ;;  %s3744_s18 = smov [#allocation5]   ;;  %s3604_s22 = scalar_lea.hbm %s3903_s1, 40960 }
   0x4   :  { %s29_s19 = sshll.u32 %s3744_s18, 4  ;;  %p3605_p0 = scmp.ne.s32.totalorder %s3903_s1, %s3604_s22  ;;  %s30_s19 = int_to_ptr.vmem [resolvable:$true] %s29_s19 }
   0x5   :  { %p3608_p1 = scmp.lt.u32.totalorder %s3604_s22, %s3903_s1 }
   0x7   :  { %p3610_p2 = pnand %p3608_p1, %p3605_p0 }
   0x9   :  { %3613 = shalt.err (!%p3610_p2)
}
   0xa   :  { %s3614_s27 = scalar_lea.vmem %s30_s19, 40960  ;;  %p3619_p4 = scmp.lt.s32.totalorder %s30_s19, %s30_s19 }
   0xb   :  { %p3615_p3 = scmp.ne.s32.totalorder %s30_s19, %s3614_s27  ;;  %p3620_p5 = scmp.lt.s32.totalorder %s3614_s27, %s3614_s27 }
   0xd   :  { %p3621_p6 = por %p3620_p5, %p3619_p4 }
   0xf   :  { %p3622_p7 = pnand %p3621_p6, %p3615_p3 }
  0x11   :  { %3625 = shalt.err (!%p3622_p7)
}
  0x12   :  { %s3745_s28 = smov 128   ;;  %s3746_s29 = smov 8  }
  0x13   :  { %35 = dma.hbm_to_vmem [thread:$0]  %s3903_s1, 40960, %s30_s19, [#allocation6], %s3745_s28, %s3745_s28, %s3746_s29  }
  0x14   :  { %s3747_s7 = smov [#allocation8]   ;;  %s3748_s9 = smov [#allocation2]  }
  0x15   :  { %s51_s8 = sshll.u32 %s3747_s7, 4  ;;  %s20_s10 = sshll.u32 %s3748_s9, 4  ;;  %s52_s8 = int_to_ptr.vmem [resolvable:$true] %s51_s8  ;;  %s21_s10 = int_to_ptr.vmem [resolvable:$true] %s20_s10 }
  0x16   :  { %s3626_s13 = scalar_lea.hbm %s3905_s3, 4096 }
  0x17   :  { %p3627_p8 = scmp.ne.s32.totalorder %s3905_s3, %s3626_s13  ;;  %p3630_p9 = scmp.lt.u32.totalorder %s3626_s13, %s3905_s3 }
  0x19   :  { %p3632_p10 = pnand %p3630_p9, %p3627_p8 }
  0x1b   :  { %3635 = shalt.err (!%p3632_p10)
}
  0x1c   :  { %s3636_s1 = scalar_lea.vmem %s52_s8, 4096  ;;  %p3641_p12 = scmp.lt.s32.totalorder %s52_s8, %s52_s8 }
  0x1d   :  { %p3637_p11 = scmp.ne.s32.totalorder %s52_s8, %s3636_s1  ;;  %p3642_p13 = scmp.lt.s32.totalorder %s3636_s1, %s3636_s1 }
  0x1f   :  { %p3643_p0 = por %p3642_p13, %p3641_p12 }
  0x21   :  { %p3644_p1 = pnand %p3643_p0, %p3637_p11 }
  0x23   :  { %3647 = shalt.err (!%p3644_p1)
}
  0x24   :  { %57 = dma.hbm_to_vmem [thread:$0]  %s3905_s3, 4096, %s52_s8, [#allocation9], %s3745_s28, %s3745_s28, %s3746_s29  }
  0x25   :  { %s3648_s22 = scalar_lea.hbm %s3902_s0, 1280 }
  0x26   :  { %p3649_p2 = scmp.ne.s32.totalorder %s3902_s0, %s3648_s22  ;;  %p3652_p3 = scmp.lt.u32.totalorder %s3648_s22, %s3902_s0 }
  0x28   :  { %p3654_p4 = pnand %p3652_p3, %p3649_p2 }
  0x2a   :  { %3657 = shalt.err (!%p3654_p4)
}
  0x2b   :  { %s3658_s27 = scalar_lea.vmem %s21_s10, 1280  ;;  %p3663_p6 = scmp.lt.s32.totalorder %s21_s10, %s21_s10 }
  0x2c   :  { %p3659_p5 = scmp.ne.s32.totalorder %s21_s10, %s3658_s27  ;;  %p3664_p7 = scmp.lt.s32.totalorder %s3658_s27, %s3658_s27 }
  0x2e   :  { %p3665_p8 = por %p3664_p7, %p3663_p6 }
  0x30   :  { %p3666_p9 = pnand %p3665_p8, %p3659_p5 }
  0x32   :  { %3669 = shalt.err (!%p3666_p9)
}
  0x33   :  { %23 = dma.hbm_to_vmem [thread:$0]  %s3902_s0, 1280, %s21_s10, [#allocation3]  }
  0x34   :  { %s3749_s29 = smov [#allocation7]   ;;  %s3750_s6 = smov [#allocation10]  }
  0x35   :  { %s42_s30 = sshll.u32 %s3749_s29, 4  ;;  %s64_s7 = sshll.u32 %s3750_s6, 4  ;;  %s43_s30 = int_to_ptr.vmem [resolvable:$true] %s42_s30  ;;  %s65_s7 = int_to_ptr.vmem [resolvable:$true] %s64_s7 }
  0x36   :  { %s3670_s11 = scalar_lea.hbm %s3904_s2, 32 }
  0x37   :  { %p3671_p10 = scmp.ne.s32.totalorder %s3904_s2, %s3670_s11  ;;  %p3674_p11 = scmp.lt.u32.totalorder %s3670_s11, %s3904_s2 }
  0x39   :  { %p3676_p12 = pnand %p3674_p11, %p3671_p10 }
  0x3b   :  { %3679 = shalt.err (!%p3676_p12)
}
  0x3c   :  { %s3680_s0 = scalar_lea.vmem %s43_s30, 32  ;;  %p3685_p0 = scmp.lt.s32.totalorder %s43_s30, %s43_s30 }
  0x3d   :  { %p3681_p13 = scmp.ne.s32.totalorder %s43_s30, %s3680_s0  ;;  %p3686_p1 = scmp.lt.s32.totalorder %s3680_s0, %s3680_s0 }
  0x3f   :  { %p3687_p2 = por %p3686_p1, %p3685_p0 }
  0x41   :  { %p3688_p3 = pnand %p3687_p2, %p3681_p13 }
  0x43   :  { %3691 = shalt.err (!%p3688_p3)
}
  0x44   :  { %45 = dma.hbm_to_vmem [thread:$0]  %s3904_s2, 32, %s43_s30, [#allocation6]  }
  0x45   :  { %s3692_s18 = scalar_lea.hbm %s3906_s4, 16 }
  0x46   :  { %p3693_p4 = scmp.ne.s32.totalorder %s3906_s4, %s3692_s18  ;;  %p3696_p5 = scmp.lt.u32.totalorder %s3692_s18, %s3906_s4 }
  0x48   :  { %p3698_p6 = pnand %p3696_p5, %p3693_p4 }
  0x4a   :  { %3701 = shalt.err (!%p3698_p6)
}
  0x4b   :  { %s3702_s23 = scalar_lea.vmem %s65_s7, 16  ;;  %s3706_s24 = scalar_lea.vmem %s65_s7, 32 }
  0x4c   :  { %p3703_p7 = scmp.ne.s32.totalorder %s65_s7, %s3702_s23  ;;  %p3707_p8 = scmp.lt.s32.totalorder %s65_s7, %s65_s7 }
  0x4d   :  { %p3708_p9 = scmp.lt.s32.totalorder %s3706_s24, %s3702_s23 }
  0x4f   :  { %p3709_p10 = por %p3708_p9, %p3707_p8 }
  0x51   :  { %p3710_p11 = pnand %p3709_p10, %p3703_p7 }
  0x53   :  { %3713 = shalt.err (!%p3710_p11)
}
  0x54   :  { %67 = dma.hbm_to_vmem [thread:$0]  %s3906_s4, 16, %s65_s7, [#allocation9]  }
  0x55   :  { %3736 = dma.done.wait [#allocation3], 1280  }
  0x56   :  { %3737 = vsyncadd [#allocation3], 4294966016 }
  0x57   :  { %3738 = dma.done.wait [#allocation6], 40992  }
  0x58   :  { %3739 = vsyncadd [#allocation6], 4294926304 }
  0x59   :  { %3740 = dma.done.wait [#allocation9], 4112  }
  0x5a   :  { %3741 = vsyncadd [#allocation9], 4294963184  ;;  %v3100_v0 = vld [vmem:[#allocation5 + $0x4] ss:$8 sps:$4 sm:$0xff]   ;;  %v3104_v2 = vld [vmem:[#allocation5] ss:$8 sps:$4 sm:$0xff]  }
  0x5b   :  { %v3102_v1 = vld [vmem:[#allocation5 + $0x504] ss:$8 sps:$4 sm:$0xff]   ;;  %2095 = vmatprep.subr.bf16.mxu1 %v3100_v0  ;;  %v3105_v3 = vld [vmem:[#allocation5 + $0x500] ss:$8 sps:$4 sm:$0xff]   ;;  %v3106_v4 = vld [vmem:[#allocation5 + $0x14] ss:$8 sps:$4 sm:$0xff]  }
  0x5c   :  { %2300 = vmatprep.subr.bf16.mxu0 %v3102_v1  ;;  %2096 = vmatpush1.bf16.msra.mxu1 %v3104_v2  ;;  %v3108_v5 = vld [vmem:[#allocation5 + $0x514] ss:$8 sps:$4 sm:$0xff]   ;;  %v3110_v6 = vld [vmem:[#allocation5 + $0x10] ss:$8 sps:$4 sm:$0xff]   ;;  %v3112_v8 = vld [vmem:[#allocation5 + $0x24] ss:$8 sps:$4 sm:$0xff]  }
  0x5d   :  { %2301 = vmatpush1.bf16.msra.mxu0 %v3105_v3  ;;  %2097 = vmatprep.subr.bf16.mxu1 %v3106_v4  ;;  %v3111_v7 = vld [vmem:[#allocation5 + $0x510] ss:$8 sps:$4 sm:$0xff]   ;;  %v3114_v9 = vld [vmem:[#allocation5 + $0x524] ss:$8 sps:$4 sm:$0xff]   ;;  %v3116_v10 = vld [vmem:[#allocation5 + $0x20] ss:$8 sps:$4 sm:$0xff]  }
  0x5e   :  { %2302 = vmatprep.subr.bf16.mxu0 %v3108_v5  ;;  %v3117_v11 = vld [vmem:[#allocation5 + $0x520] ss:$8 sps:$4 sm:$0xff]   ;;  %v3118_v12 = vld [vmem:[#allocation5 + $0x34] ss:$8 sps:$4 sm:$0xff]   ;;  %v3122_v14 = vld [vmem:[#allocation5 + $0x30] ss:$8 sps:$4 sm:$0xff]  }
  0x5f   :  { %v3120_v13 = vld [vmem:[#allocation5 + $0x534] ss:$8 sps:$4 sm:$0xff]   ;;  %v3123_v15 = vld [vmem:[#allocation5 + $0x530] ss:$8 sps:$4 sm:$0xff]   ;;  %v3124_v16 = vld [vmem:[#allocation5 + $0x44] ss:$8 sps:$4 sm:$0xff]  }
  0x60   :  { %2098 = vmatpush1.bf16.msra.mxu1 %v3110_v6  ;;  %v3126_v17 = vld [vmem:[#allocation5 + $0x544] ss:$8 sps:$4 sm:$0xff]   ;;  %v3128_v18 = vld [vmem:[#allocation5 + $0x40] ss:$8 sps:$4 sm:$0xff]   ;;  %v3130_v20 = vld [vmem:[#allocation5 + $0x54] ss:$8 sps:$4 sm:$0xff]  }
  0x61   :  { %2303 = vmatpush1.bf16.msra.mxu0 %v3111_v7  ;;  %2099 = vmatprep.subr.bf16.mxu1 %v3112_v8  ;;  %v3129_v19 = vld [vmem:[#allocation5 + $0x540] ss:$8 sps:$4 sm:$0xff]   ;;  %v3132_v21 = vld [vmem:[#allocation5 + $0x554] ss:$8 sps:$4 sm:$0xff]   ;;  %v3134_v22 = vld [vmem:[#allocation5 + $0x50] ss:$8 sps:$4 sm:$0xff]  }
  0x62   :  { %2304 = vmatprep.subr.bf16.mxu0 %v3114_v9  ;;  %v3135_v23 = vld [vmem:[#allocation5 + $0x550] ss:$8 sps:$4 sm:$0xff]   ;;  %v3136_v24 = vld [vmem:[#allocation5 + $0x64] ss:$8 sps:$4 sm:$0xff]   ;;  %v3140_v26 = vld [vmem:[#allocation5 + $0x60] ss:$8 sps:$4 sm:$0xff]  }
  0x63   :  { %v3138_v25 = vld [vmem:[#allocation5 + $0x564] ss:$8 sps:$4 sm:$0xff]   ;;  %v3141_v27 = vld [vmem:[#allocation5 + $0x560] ss:$8 sps:$4 sm:$0xff]   ;;  %v3142_v28 = vld [vmem:[#allocation5 + $0x74] ss:$8 sps:$4 sm:$0xff]  }
  0x64   :  { %2100 = vmatpush1.bf16.msra.mxu1 %v3116_v10  ;;  %v3144_v29 = vld [vmem:[#allocation5 + $0x574] ss:$8 sps:$4 sm:$0xff]   ;;  %v3146_v30 = vld [vmem:[#allocation5 + $0x70] ss:$8 sps:$4 sm:$0xff]   ;;  %v3148_v32 = vld [vmem:[#allocation5 + $0x84] ss:$8 sps:$4 sm:$0xff]  }
  0x65   :  { %2305 = vmatpush1.bf16.msra.mxu0 %v3117_v11  ;;  %2101 = vmatprep.subr.bf16.mxu1 %v3118_v12  ;;  %v3147_v31 = vld [vmem:[#allocation5 + $0x570] ss:$8 sps:$4 sm:$0xff]   ;;  %v3150_v33 = vld [vmem:[#allocation5 + $0x584] ss:$8 sps:$4 sm:$0xff]   ;;  %v3152_v34 = vld [vmem:[#allocation5 + $0x80] ss:$8 sps:$4 sm:$0xff]  }
  0x66   :  { %2306 = vmatprep.subr.bf16.mxu0 %v3120_v13  ;;  %v3153_v35 = vld [vmem:[#allocation5 + $0x580] ss:$8 sps:$4 sm:$0xff]   ;;  %v3154_v36 = vld [vmem:[#allocation5 + $0x94] ss:$8 sps:$4 sm:$0xff]   ;;  %v3158_v38 = vld [vmem:[#allocation5 + $0x90] ss:$8 sps:$4 sm:$0xff]  }
  0x67   :  { %v3156_v37 = vld [vmem:[#allocation5 + $0x594] ss:$8 sps:$4 sm:$0xff]   ;;  %v3159_v39 = vld [vmem:[#allocation5 + $0x590] ss:$8 sps:$4 sm:$0xff]   ;;  %v3160_v40 = vld [vmem:[#allocation5 + $0xa4] ss:$8 sps:$4 sm:$0xff]  }
  0x68   :  { %2102 = vmatpush1.bf16.msra.mxu1 %v3122_v14  ;;  %v3162_v41 = vld [vmem:[#allocation5 + $0x5a4] ss:$8 sps:$4 sm:$0xff]   ;;  %v3164_v42 = vld [vmem:[#allocation5 + $0xa0] ss:$8 sps:$4 sm:$0xff]   ;;  %v3166_v44 = vld [vmem:[#allocation5 + $0xb4] ss:$8 sps:$4 sm:$0xff]  }
  0x69   :  { %2307 = vmatpush1.bf16.msra.mxu0 %v3123_v15  ;;  %2103 = vmatprep.subr.bf16.mxu1 %v3124_v16  ;;  %v3165_v43 = vld [vmem:[#allocation5 + $0x5a0] ss:$8 sps:$4 sm:$0xff]   ;;  %v3168_v45 = vld [vmem:[#allocation5 + $0x5b4] ss:$8 sps:$4 sm:$0xff]   ;;  %v3170_v47 = vld [vmem:[#allocation5 + $0xb0] ss:$8 sps:$4 sm:$0xff]  }
  0x6a   :  { %2308 = vmatprep.subr.bf16.mxu0 %v3126_v17  ;;  %v83_v46 = vld [vmem:[#allocation2] sm:$0xff]  ;;  %v88_v50 = vld [vmem:[#allocation2 + $0x28] sm:$0xff]  ;;  %v3172_v51 = vld [vmem:[#allocation5 + $0xc4] ss:$8 sps:$4 sm:$0xff]   ;;  %s3751_s4 = smov [#allocation11]  }
  0x6b   :  { %v2649_v48 = vcombine.high %v83_v46, %v83_v46  ;;  %v3171_v49 = vld [vmem:[#allocation5 + $0x5b0] ss:$8 sps:$4 sm:$0xff]   ;;  %v3174_v52 = vld [vmem:[#allocation5 + $0x5c4] ss:$8 sps:$4 sm:$0xff]   ;;  %v2659_v53 = vcombine.high %v88_v50, %v88_v50  ;;  %v3176_v54 = vld [vmem:[#allocation5 + $0xc0] ss:$8 sps:$4 sm:$0xff]   ;;  %v2648_v6 = vcombine.low %v83_v46, %v83_v46  ;;  %v2658_v7 = vcombine.low %v88_v50, %v88_v50 }
  0x6c   :  { %2104 = vmatpush1.bf16.msra.mxu1 %v3128_v18  ;;  %v3177_v55 = vld [vmem:[#allocation5 + $0x5c0] ss:$8 sps:$4 sm:$0xff]   ;;  %v3178_v56 = vld [vmem:[#allocation5 + $0xd4] ss:$8 sps:$4 sm:$0xff]   ;;  %v3182_v58 = vld [vmem:[#allocation5 + $0xd0] ss:$8 sps:$4 sm:$0xff]  }
  0x6d   :  { %2309 = vmatpush1.bf16.msra.mxu0 %v3129_v19  ;;  %2105 = vmatprep.subr.bf16.mxu1 %v3130_v20  ;;  %v3180_v57 = vld [vmem:[#allocation5 + $0x5d4] ss:$8 sps:$4 sm:$0xff]   ;;  %v3183_v59 = vld [vmem:[#allocation5 + $0x5d0] ss:$8 sps:$4 sm:$0xff]   ;;  %v3184_v60 = vld [vmem:[#allocation5 + $0xe4] ss:$8 sps:$4 sm:$0xff]  }
  0x6e   :  { %2310 = vmatprep.subr.bf16.mxu0 %v3132_v21  ;;  %2127 = vmatprep.mubr.bf16.mxu1 %v2649_v48  ;;  %v3186_v61 = vld [vmem:[#allocation5 + $0x5e4] ss:$8 sps:$4 sm:$0xff]   ;;  %v3188_v62 = vld [vmem:[#allocation5 + $0xe0] ss:$8 sps:$4 sm:$0xff]   ;;  %v3190_v0 = vld [vmem:[#allocation5 + $0xf4] ss:$8 sps:$4 sm:$0xff]  }
  0x6f   :  { %2332 = vmatprep.mubr.bf16.mxu0 %v2659_v53  ;;  %v3189_v63 = vld [vmem:[#allocation5 + $0x5e0] ss:$8 sps:$4 sm:$0xff]   ;;  %v3192_v1 = vld [vmem:[#allocation5 + $0x5f4] ss:$8 sps:$4 sm:$0xff]   ;;  %v3194_v2 = vld [vmem:[#allocation5 + $0xf0] ss:$8 sps:$4 sm:$0xff]  }
  0x70   :  { %2106 = vmatpush1.bf16.msra.mxu1 %v3134_v22  ;;  %v3195_v3 = vld [vmem:[#allocation5 + $0x5f0] ss:$8 sps:$4 sm:$0xff]   ;;  %v3200_v4 = vld [vmem:[#allocation5 + $0x104] ss:$8 sps:$4 sm:$0xff]   ;;  %v3198_v8 = vld [vmem:[#allocation5 + $0x100] ss:$8 sps:$4 sm:$0xff]  }
  0x71   :  { %2311 = vmatpush1.bf16.msra.mxu0 %v3135_v23  ;;  %2107 = vmatprep.subr.bf16.mxu1 %v3136_v24  ;;  %v3205_v5 = vld [vmem:[#allocation5 + $0x604] ss:$8 sps:$4 sm:$0xff]   ;;  %v3203_v9 = vld [vmem:[#allocation5 + $0x600] ss:$8 sps:$4 sm:$0xff]   ;;  %v3208_v10 = vld [vmem:[#allocation5 + $0x114] ss:$8 sps:$4 sm:$0xff]  }
  0x72   :  { %2312 = vmatprep.subr.bf16.mxu0 %v3138_v25  ;;  %v3211_v11 = vld [vmem:[#allocation5 + $0x614] ss:$8 sps:$4 sm:$0xff]   ;;  %v3206_v12 = vld [vmem:[#allocation5 + $0x110] ss:$8 sps:$4 sm:$0xff]   ;;  %v3214_v14 = vld [vmem:[#allocation5 + $0x124] ss:$8 sps:$4 sm:$0xff]  }
  0x73   :  { %v3209_v13 = vld [vmem:[#allocation5 + $0x610] ss:$8 sps:$4 sm:$0xff]   ;;  %v3217_v15 = vld [vmem:[#allocation5 + $0x624] ss:$8 sps:$4 sm:$0xff]   ;;  %v3212_v16 = vld [vmem:[#allocation5 + $0x120] ss:$8 sps:$4 sm:$0xff]  }
  0x74   :  { %2108 = vmatpush1.bf16.msra.mxu1 %v3140_v26  ;;  %v3215_v17 = vld [vmem:[#allocation5 + $0x620] ss:$8 sps:$4 sm:$0xff]   ;;  %v3220_v18 = vld [vmem:[#allocation5 + $0x134] ss:$8 sps:$4 sm:$0xff]   ;;  %v3218_v20 = vld [vmem:[#allocation5 + $0x130] ss:$8 sps:$4 sm:$0xff]  }
  0x75   :  { %2313 = vmatpush1.bf16.msra.mxu0 %v3141_v27  ;;  %2109 = vmatprep.subr.bf16.mxu1 %v3142_v28  ;;  %v3223_v19 = vld [vmem:[#allocation5 + $0x634] ss:$8 sps:$4 sm:$0xff]   ;;  %v3221_v21 = vld [vmem:[#allocation5 + $0x630] ss:$8 sps:$4 sm:$0xff]   ;;  %v3226_v22 = vld [vmem:[#allocation5 + $0x144] ss:$8 sps:$4 sm:$0xff]  }
  0x76   :  { %2314 = vmatprep.subr.bf16.mxu0 %v3144_v29  ;;  %v3229_v23 = vld [vmem:[#allocation5 + $0x644] ss:$8 sps:$4 sm:$0xff]   ;;  %v3224_v24 = vld [vmem:[#allocation5 + $0x140] ss:$8 sps:$4 sm:$0xff]   ;;  %v3232_v26 = vld [vmem:[#allocation5 + $0x154] ss:$8 sps:$4 sm:$0xff]  }
  0x77   :  { %v3227_v25 = vld [vmem:[#allocation5 + $0x640] ss:$8 sps:$4 sm:$0xff]   ;;  %v3235_v27 = vld [vmem:[#allocation5 + $0x654] ss:$8 sps:$4 sm:$0xff]   ;;  %v3230_v28 = vld [vmem:[#allocation5 + $0x150] ss:$8 sps:$4 sm:$0xff]  }
  0x78   :  { %2110 = vmatpush1.bf16.msra.mxu1 %v3146_v30  ;;  %v3233_v29 = vld [vmem:[#allocation5 + $0x650] ss:$8 sps:$4 sm:$0xff]   ;;  %v3238_v30 = vld [vmem:[#allocation5 + $0x164] ss:$8 sps:$4 sm:$0xff]   ;;  %v3256_v46 = vld [vmem:[#allocation5 + $0x194] ss:$8 sps:$4 sm:$0xff]  }
  0x79   :  { %2315 = vmatpush1.bf16.msra.mxu0 %v3147_v31  ;;  %2111 = vmatprep.subr.bf16.mxu1 %v3148_v32  ;;  %v3241_v31 = vld [vmem:[#allocation5 + $0x664] ss:$8 sps:$4 sm:$0xff]   ;;  %v3842_v32 = vld [vmem:[#allocation2 + $0x8] sm:$0xff]  ;;  %v3263_v53 = vld [vmem:[#allocation5 + $0x6a0] ss:$8 sps:$4 sm:$0xff]   ;;  %s2637_s26 = sshll.u32 %s3751_s4, 4  ;;  %s2638_s26 = int_to_ptr.vmem [resolvable:$true] %s2637_s26 }
  0x7a   :  { %2316 = vmatprep.subr.bf16.mxu0 %v3150_v33  ;;  %v3236_v33 = vld [vmem:[#allocation5 + $0x160] ss:$8 sps:$4 sm:$0xff]   ;;  %v3254_v48 = vld [vmem:[#allocation5 + $0x190] ss:$8 sps:$4 sm:$0xff]   ;;  %v3262_v50 = vld [vmem:[#allocation5 + $0x1a4] ss:$8 sps:$4 sm:$0xff]   ;;  %p3719_p13 = scmp.lt.s32.totalorder %s2638_s26, %s2638_s26 }
  0x7b   :  { %s3714_s27 = scalar_lea.vmem %s2638_s26, 128 }
  0x7c   :  { %2112 = vmatpush1.bf16.msra.mxu1 %v3152_v34  ;;  %v3239_v34 = vld [vmem:[#allocation5 + $0x660] ss:$8 sps:$4 sm:$0xff]   ;;  %p3715_p12 = scmp.ne.s32.totalorder %s2638_s26, %s3714_s27  ;;  %p3720_p0 = scmp.lt.s32.totalorder %s3714_s27, %s3714_s27 }
  0x7d   :  { %2317 = vmatpush1.bf16.msra.mxu0 %v3153_v35  ;;  %2113 = vmatprep.subr.bf16.mxu1 %v3154_v36  ;;  %v2651_v35 = vcombine.high %v3842_v32, %v3842_v32  ;;  %v3846_v36 = vld [vmem:[#allocation2 + $0x30] sm:$0xff] }
  0x7e   :  { %2318 = vmatprep.subr.bf16.mxu0 %v3156_v37  ;;  %v3244_v37 = vld [vmem:[#allocation5 + $0x174] ss:$8 sps:$4 sm:$0xff]   ;;  %p3721_p1 = por %p3720_p0, %p3719_p13 }
  0x80   :  { %2114 = vmatpush1.bf16.msra.mxu1 %v3158_v38  ;;  %v2661_v38 = vcombine.high %v3846_v36, %v3846_v36  ;;  %p3722_p2 = pnand %p3721_p1, %p3715_p12 }
  0x81   :  { %2319 = vmatpush1.bf16.msra.mxu0 %v3159_v39  ;;  %2115 = vmatprep.subr.bf16.mxu1 %v3160_v40  ;;  %v3247_v39 = vld [vmem:[#allocation5 + $0x674] ss:$8 sps:$4 sm:$0xff]   ;;  %v3242_v40 = vld [vmem:[#allocation5 + $0x170] ss:$8 sps:$4 sm:$0xff]  }
  0x82   :  { %2320 = vmatprep.subr.bf16.mxu0 %v3162_v41  ;;  %v3245_v41 = vld [vmem:[#allocation5 + $0x670] ss:$8 sps:$4 sm:$0xff]  }
  0x84   :  { %2116 = vmatpush1.bf16.msra.mxu1 %v3164_v42  ;;  %v3250_v42 = vld [vmem:[#allocation5 + $0x184] ss:$8 sps:$4 sm:$0xff]  }
  0x85   :  { %2321 = vmatpush1.bf16.msra.mxu0 %v3165_v43  ;;  %2117 = vmatprep.subr.bf16.mxu1 %v3166_v44  ;;  %v3253_v43 = vld [vmem:[#allocation5 + $0x684] ss:$8 sps:$4 sm:$0xff]   ;;  %v3248_v44 = vld [vmem:[#allocation5 + $0x180] ss:$8 sps:$4 sm:$0xff]  }
  0x86   :  { %2322 = vmatprep.subr.bf16.mxu0 %v3168_v45  ;;  %v3251_v45 = vld [vmem:[#allocation5 + $0x680] ss:$8 sps:$4 sm:$0xff]  }
  0x88   :  { %2118 = vmatpush1.bf16.msra.mxu1 %v3170_v47  ;;  %v3259_v47 = vld [vmem:[#allocation5 + $0x694] ss:$8 sps:$4 sm:$0xff]  }
  0x89   :  { %2323 = vmatpush1.bf16.msra.mxu0 %v3171_v49  ;;  %2119 = vmatprep.subr.bf16.mxu1 %v3172_v51  ;;  %v3257_v49 = vld [vmem:[#allocation5 + $0x690] ss:$8 sps:$4 sm:$0xff]   ;;  %v3265_v51 = vld [vmem:[#allocation5 + $0x6a4] ss:$8 sps:$4 sm:$0xff]  }
  0x8a   :  { %2324 = vmatprep.subr.bf16.mxu0 %v3174_v52  ;;  %v3260_v52 = vld [vmem:[#allocation5 + $0x1a0] ss:$8 sps:$4 sm:$0xff]  }
  0x8c   :  { %2120 = vmatpush1.bf16.msra.mxu1 %v3176_v54  ;;  %v3268_v54 = vld [vmem:[#allocation5 + $0x1b4] ss:$8 sps:$4 sm:$0xff]  }
  0x8d   :  { %2325 = vmatpush1.bf16.msra.mxu0 %v3177_v55  ;;  %2121 = vmatprep.subr.bf16.mxu1 %v3178_v56  ;;  %v3271_v55 = vld [vmem:[#allocation5 + $0x6b4] ss:$8 sps:$4 sm:$0xff]   ;;  %v3266_v56 = vld [vmem:[#allocation5 + $0x1b0] ss:$8 sps:$4 sm:$0xff]  }
  0x8e   :  { %2326 = vmatprep.subr.bf16.mxu0 %v3180_v57  ;;  %v3269_v57 = vld [vmem:[#allocation5 + $0x6b0] ss:$8 sps:$4 sm:$0xff]  }
  0x90   :  { %2122 = vmatpush1.bf16.msra.mxu1 %v3182_v58  ;;  %v3274_v58 = vld [vmem:[#allocation5 + $0x1c4] ss:$8 sps:$4 sm:$0xff]  }
  0x91   :  { %2327 = vmatpush1.bf16.msra.mxu0 %v3183_v59  ;;  %2123 = vmatprep.subr.bf16.mxu1 %v3184_v60  ;;  %v3277_v59 = vld [vmem:[#allocation5 + $0x6c4] ss:$8 sps:$4 sm:$0xff]   ;;  %v3272_v60 = vld [vmem:[#allocation5 + $0x1c0] ss:$8 sps:$4 sm:$0xff]  }
  0x92   :  { %2328 = vmatprep.subr.bf16.mxu0 %v3186_v61  ;;  %v3275_v61 = vld [vmem:[#allocation5 + $0x6c0] ss:$8 sps:$4 sm:$0xff]  }
  0x94   :  { %2124 = vmatpush1.bf16.msra.mxu1 %v3188_v62  ;;  %v3280_v62 = vld [vmem:[#allocation5 + $0x1d4] ss:$8 sps:$4 sm:$0xff]  }
  0x95   :  { %2329 = vmatpush1.bf16.msra.mxu0 %v3189_v63  ;;  %2125 = vmatprep.subr.bf16.mxu1 %v3190_v0  ;;  %v3283_v63 = vld [vmem:[#allocation5 + $0x6d4] ss:$8 sps:$4 sm:$0xff]   ;;  %v3278_v0 = vld [vmem:[#allocation5 + $0x1d0] ss:$8 sps:$4 sm:$0xff]  }
  0x96   :  { %2330 = vmatprep.subr.bf16.mxu0 %v3192_v1  ;;  %v3281_v1 = vld [vmem:[#allocation5 + $0x6d0] ss:$8 sps:$4 sm:$0xff]  }
  0x98   :  { %2126 = vmatpush1.bf16.msra.mxu1 %v3194_v2  ;;  %v3286_v2 = vld [vmem:[#allocation5 + $0x1e4] ss:$8 sps:$4 sm:$0xff]  }
  0x99   :  { %2331 = vmatpush1.bf16.msra.mxu0 %v3195_v3  ;;  %2136 = vmatprep.subr.bf16.mxu1 %v3200_v4  ;;  %v3289_v3 = vld [vmem:[#allocation5 + $0x6e4] ss:$8 sps:$4 sm:$0xff]   ;;  %v3284_v4 = vld [vmem:[#allocation5 + $0x1e0] ss:$8 sps:$4 sm:$0xff]  }
  0x9a   :  { %2341 = vmatprep.subr.bf16.mxu0 %v3205_v5  ;;  %v3287_v5 = vld [vmem:[#allocation5 + $0x6e0] ss:$8 sps:$4 sm:$0xff]  }
  0x9b   :  { %2128 = vmatmul.mubr.bf16.vlgmr.msra.gmra.mrb[0].mxu1 %v2648_v6  ;;  %v3292_v6 = vld [vmem:[#allocation5 + $0x1f4] ss:$8 sps:$4 sm:$0xff]  }
  0x9c   :  { %2333 = vmatmul.mubr.bf16.vlgmr.msra.gmra.mrb[0].mxu0 %v2658_v7  ;;  %2137 = vmatpush1.bf16.msra.mxu1 %v3198_v8  ;;  %v3295_v7 = vld [vmem:[#allocation5 + $0x6f4] ss:$8 sps:$4 sm:$0xff]   ;;  %v3290_v8 = vld [vmem:[#allocation5 + $0x1f0] ss:$8 sps:$4 sm:$0xff]  }
  0x9d   :  { %2342 = vmatpush1.bf16.msra.mxu0 %v3203_v9  ;;  %2138 = vmatprep.subr.bf16.mxu1 %v3208_v10  ;;  %v3293_v9 = vld [vmem:[#allocation5 + $0x6f0] ss:$8 sps:$4 sm:$0xff]   ;;  %v3300_v10 = vld [vmem:[#allocation5 + $0x204] ss:$8 sps:$4 sm:$0xff]  }
  0x9e   :  { %2343 = vmatprep.subr.bf16.mxu0 %v3211_v11  ;;  %2168 = vmatprep.mubr.bf16.mxu1 %v2651_v35  ;;  %v3305_v11 = vld [vmem:[#allocation5 + $0x704] ss:$8 sps:$4 sm:$0xff]   ;;  %v3327_v35 = vld [vmem:[#allocation5 + $0x740] ss:$8 sps:$4 sm:$0xff]  }
  0x9f   :  { %2373 = vmatprep.mubr.bf16.mxu0 %v2661_v38  ;;  %v3330_v38 = vld [vmem:[#allocation5 + $0x250] ss:$8 sps:$4 sm:$0xff]  }
  0xa0   :  { %2139 = vmatpush1.bf16.msra.mxu1 %v3206_v12  ;;  %v2650_v12 = vcombine.low %v3842_v32, %v3842_v32  ;;  %v3326_v32 = vld [vmem:[#allocation5 + $0x244] ss:$8 sps:$4 sm:$0xff]  }
  0xa1   :  { %2344 = vmatpush1.bf16.msra.mxu0 %v3209_v13  ;;  %2140 = vmatprep.subr.bf16.mxu1 %v3214_v14  ;;  %v3298_v13 = vld [vmem:[#allocation5 + $0x200] ss:$8 sps:$4 sm:$0xff]   ;;  %v2660_v14 = vcombine.low %v3846_v36, %v3846_v36  ;;  %v3332_v36 = vld [vmem:[#allocation5 + $0x254] ss:$8 sps:$4 sm:$0xff]  }
  0xa2   :  { %2345 = vmatprep.subr.bf16.mxu0 %v3217_v15  ;;  %v3303_v15 = vld [vmem:[#allocation5 + $0x700] ss:$8 sps:$4 sm:$0xff]  }
  0xa4   :  { %2141 = vmatpush1.bf16.msra.mxu1 %v3212_v16  ;;  %v3308_v16 = vld [vmem:[#allocation5 + $0x214] ss:$8 sps:$4 sm:$0xff]  }
  0xa5   :  { %2346 = vmatpush1.bf16.msra.mxu0 %v3215_v17  ;;  %2142 = vmatprep.subr.bf16.mxu1 %v3220_v18  ;;  %v3311_v17 = vld [vmem:[#allocation5 + $0x714] ss:$8 sps:$4 sm:$0xff]   ;;  %v3854_v18 = vld [vmem:[#allocation2 + $0x10] sm:$0xff] }
  0xa6   :  { %2347 = vmatprep.subr.bf16.mxu0 %v3223_v19  ;;  %v2653_v19 = vcombine.high %v3854_v18, %v3854_v18 }
  0xa8   :  { %2143 = vmatpush1.bf16.msra.mxu1 %v3218_v20  ;;  %v3858_v20 = vld [vmem:[#allocation2 + $0x38] sm:$0xff] }
  0xa9   :  { %2348 = vmatpush1.bf16.msra.mxu0 %v3221_v21  ;;  %2144 = vmatprep.subr.bf16.mxu1 %v3226_v22  ;;  %v3306_v21 = vld [vmem:[#allocation5 + $0x210] ss:$8 sps:$4 sm:$0xff]  }
  0xaa   :  { %2349 = vmatprep.subr.bf16.mxu0 %v3229_v23  ;;  %v3309_v22 = vld [vmem:[#allocation5 + $0x710] ss:$8 sps:$4 sm:$0xff]   ;;  %v2663_v23 = vcombine.high %v3858_v20, %v3858_v20 }
  0xac   :  { %2145 = vmatpush1.bf16.msra.mxu1 %v3224_v24  ;;  %v3314_v24 = vld [vmem:[#allocation5 + $0x224] ss:$8 sps:$4 sm:$0xff]  }
  0xad   :  { %2350 = vmatpush1.bf16.msra.mxu0 %v3227_v25  ;;  %2146 = vmatprep.subr.bf16.mxu1 %v3232_v26  ;;  %v3317_v25 = vld [vmem:[#allocation5 + $0x724] ss:$8 sps:$4 sm:$0xff]   ;;  %v3312_v26 = vld [vmem:[#allocation5 + $0x220] ss:$8 sps:$4 sm:$0xff]  }
  0xae   :  { %2351 = vmatprep.subr.bf16.mxu0 %v3235_v27  ;;  %v3315_v27 = vld [vmem:[#allocation5 + $0x720] ss:$8 sps:$4 sm:$0xff]  }
  0xb0   :  { %2147 = vmatpush1.bf16.msra.mxu1 %v3230_v28  ;;  %v3320_v28 = vld [vmem:[#allocation5 + $0x234] ss:$8 sps:$4 sm:$0xff]  }
  0xb1   :  { %2352 = vmatpush1.bf16.msra.mxu0 %v3233_v29  ;;  %2148 = vmatprep.subr.bf16.mxu1 %v3238_v30  ;;  %v3323_v29 = vld [vmem:[#allocation5 + $0x734] ss:$8 sps:$4 sm:$0xff]   ;;  %v3318_v30 = vld [vmem:[#allocation5 + $0x230] ss:$8 sps:$4 sm:$0xff]  }
  0xb2   :  { %2353 = vmatprep.subr.bf16.mxu0 %v3241_v31  ;;  %v3321_v31 = vld [vmem:[#allocation5 + $0x730] ss:$8 sps:$4 sm:$0xff]  }
  0xb4   :  { %2149 = vmatpush1.bf16.msra.mxu1 %v3236_v33  ;;  %v3329_v33 = vld [vmem:[#allocation5 + $0x744] ss:$8 sps:$4 sm:$0xff]  }
  0xb5   :  { %2354 = vmatpush1.bf16.msra.mxu0 %v3239_v34  ;;  %2150 = vmatprep.subr.bf16.mxu1 %v3244_v37  ;;  %v3324_v34 = vld [vmem:[#allocation5 + $0x240] ss:$8 sps:$4 sm:$0xff]   ;;  %v3335_v37 = vld [vmem:[#allocation5 + $0x754] ss:$8 sps:$4 sm:$0xff]  }
  0xb6   :  { %2355 = vmatprep.subr.bf16.mxu0 %v3247_v39  ;;  %v3333_v39 = vld [vmem:[#allocation5 + $0x750] ss:$8 sps:$4 sm:$0xff]  }
  0xb8   :  { %2151 = vmatpush1.bf16.msra.mxu1 %v3242_v40  ;;  %v3338_v40 = vld [vmem:[#allocation5 + $0x264] ss:$8 sps:$4 sm:$0xff]  }
  0xb9   :  { %2356 = vmatpush1.bf16.msra.mxu0 %v3245_v41  ;;  %2152 = vmatprep.subr.bf16.mxu1 %v3250_v42  ;;  %v3341_v41 = vld [vmem:[#allocation5 + $0x764] ss:$8 sps:$4 sm:$0xff]   ;;  %v3336_v42 = vld [vmem:[#allocation5 + $0x260] ss:$8 sps:$4 sm:$0xff]  }
  0xba   :  { %2357 = vmatprep.subr.bf16.mxu0 %v3253_v43  ;;  %v3339_v43 = vld [vmem:[#allocation5 + $0x760] ss:$8 sps:$4 sm:$0xff]  }
  0xbc   :  { %2153 = vmatpush1.bf16.msra.mxu1 %v3248_v44  ;;  %v3344_v44 = vld [vmem:[#allocation5 + $0x274] ss:$8 sps:$4 sm:$0xff]  }
  0xbd   :  { %2358 = vmatpush1.bf16.msra.mxu0 %v3251_v45  ;;  %2154 = vmatprep.subr.bf16.mxu1 %v3256_v46  ;;  %v3347_v45 = vld [vmem:[#allocation5 + $0x774] ss:$8 sps:$4 sm:$0xff]   ;;  %v3342_v46 = vld [vmem:[#allocation5 + $0x270] ss:$8 sps:$4 sm:$0xff]  }
  0xbe   :  { %2359 = vmatprep.subr.bf16.mxu0 %v3259_v47  ;;  %v3345_v47 = vld [vmem:[#allocation5 + $0x770] ss:$8 sps:$4 sm:$0xff]  }
  0xc0   :  { %2155 = vmatpush1.bf16.msra.mxu1 %v3254_v48  ;;  %v3350_v48 = vld [vmem:[#allocation5 + $0x284] ss:$8 sps:$4 sm:$0xff]  }
  0xc1   :  { %2360 = vmatpush1.bf16.msra.mxu0 %v3257_v49  ;;  %2156 = vmatprep.subr.bf16.mxu1 %v3262_v50  ;;  %v3353_v49 = vld [vmem:[#allocation5 + $0x784] ss:$8 sps:$4 sm:$0xff]   ;;  %v3348_v50 = vld [vmem:[#allocation5 + $0x280] ss:$8 sps:$4 sm:$0xff]  }
  0xc2   :  { %2361 = vmatprep.subr.bf16.mxu0 %v3265_v51  ;;  %v3351_v51 = vld [vmem:[#allocation5 + $0x780] ss:$8 sps:$4 sm:$0xff]  }
  0xc4   :  { %2157 = vmatpush1.bf16.msra.mxu1 %v3260_v52  ;;  %v3356_v52 = vld [vmem:[#allocation5 + $0x294] ss:$8 sps:$4 sm:$0xff]  }
  0xc5   :  { %2362 = vmatpush1.bf16.msra.mxu0 %v3263_v53  ;;  %2158 = vmatprep.subr.bf16.mxu1 %v3268_v54  ;;  %v3359_v53 = vld [vmem:[#allocation5 + $0x794] ss:$8 sps:$4 sm:$0xff]   ;;  %v3354_v54 = vld [vmem:[#allocation5 + $0x290] ss:$8 sps:$4 sm:$0xff]  }
  0xc6   :  { %2363 = vmatprep.subr.bf16.mxu0 %v3271_v55  ;;  %v3357_v55 = vld [vmem:[#allocation5 + $0x790] ss:$8 sps:$4 sm:$0xff]  }
  0xc8   :  { %2159 = vmatpush1.bf16.msra.mxu1 %v3266_v56  ;;  %v3362_v56 = vld [vmem:[#allocation5 + $0x2a4] ss:$8 sps:$4 sm:$0xff]  }
  0xc9   :  { %2364 = vmatpush1.bf16.msra.mxu0 %v3269_v57  ;;  %2160 = vmatprep.subr.bf16.mxu1 %v3274_v58  ;;  %v3365_v57 = vld [vmem:[#allocation5 + $0x7a4] ss:$8 sps:$4 sm:$0xff]   ;;  %v3360_v58 = vld [vmem:[#allocation5 + $0x2a0] ss:$8 sps:$4 sm:$0xff]  }
  0xca   :  { %2365 = vmatprep.subr.bf16.mxu0 %v3277_v59  ;;  %v3363_v59 = vld [vmem:[#allocation5 + $0x7a0] ss:$8 sps:$4 sm:$0xff]  }
  0xcc   :  { %2161 = vmatpush1.bf16.msra.mxu1 %v3272_v60  ;;  %v3368_v60 = vld [vmem:[#allocation5 + $0x2b4] ss:$8 sps:$4 sm:$0xff]  }
  0xcd   :  { %2366 = vmatpush1.bf16.msra.mxu0 %v3275_v61  ;;  %2162 = vmatprep.subr.bf16.mxu1 %v3280_v62  ;;  %v3371_v61 = vld [vmem:[#allocation5 + $0x7b4] ss:$8 sps:$4 sm:$0xff]   ;;  %v3366_v62 = vld [vmem:[#allocation5 + $0x2b0] ss:$8 sps:$4 sm:$0xff]  }
  0xce   :  { %2367 = vmatprep.subr.bf16.mxu0 %v3283_v63  ;;  %v3369_v63 = vld [vmem:[#allocation5 + $0x7b0] ss:$8 sps:$4 sm:$0xff]  }
  0xd0   :  { %2163 = vmatpush1.bf16.msra.mxu1 %v3278_v0  ;;  %v3374_v0 = vld [vmem:[#allocation5 + $0x2c4] ss:$8 sps:$4 sm:$0xff]  }
  0xd1   :  { %2368 = vmatpush1.bf16.msra.mxu0 %v3281_v1  ;;  %2164 = vmatprep.subr.bf16.mxu1 %v3286_v2  ;;  %v3377_v1 = vld [vmem:[#allocation5 + $0x7c4] ss:$8 sps:$4 sm:$0xff]   ;;  %v3372_v2 = vld [vmem:[#allocation5 + $0x2c0] ss:$8 sps:$4 sm:$0xff]  }
  0xd2   :  { %2369 = vmatprep.subr.bf16.mxu0 %v3289_v3  ;;  %v3375_v3 = vld [vmem:[#allocation5 + $0x7c0] ss:$8 sps:$4 sm:$0xff]  }
  0xd4   :  { %2165 = vmatpush1.bf16.msra.mxu1 %v3284_v4  ;;  %v3380_v4 = vld [vmem:[#allocation5 + $0x2d4] ss:$8 sps:$4 sm:$0xff]  }
  0xd5   :  { %2370 = vmatpush1.bf16.msra.mxu0 %v3287_v5  ;;  %2166 = vmatprep.subr.bf16.mxu1 %v3292_v6  ;;  %v3383_v5 = vld [vmem:[#allocation5 + $0x7d4] ss:$8 sps:$4 sm:$0xff]   ;;  %v3378_v6 = vld [vmem:[#allocation5 + $0x2d0] ss:$8 sps:$4 sm:$0xff]  }
  0xd6   :  { %2371 = vmatprep.subr.bf16.mxu0 %v3295_v7  ;;  %v3381_v7 = vld [vmem:[#allocation5 + $0x7d0] ss:$8 sps:$4 sm:$0xff]  }
  0xd8   :  { %2167 = vmatpush1.bf16.msra.mxu1 %v3290_v8  ;;  %v3386_v8 = vld [vmem:[#allocation5 + $0x2e4] ss:$8 sps:$4 sm:$0xff]  }
  0xd9   :  { %2372 = vmatpush1.bf16.msra.mxu0 %v3293_v9  ;;  %2177 = vmatprep.subr.bf16.mxu1 %v3300_v10  ;;  %v3389_v9 = vld [vmem:[#allocation5 + $0x7e4] ss:$8 sps:$4 sm:$0xff]   ;;  %v3384_v10 = vld [vmem:[#allocation5 + $0x2e0] ss:$8 sps:$4 sm:$0xff]  }
  0xda   :  { %2382 = vmatprep.subr.bf16.mxu0 %v3305_v11  ;;  %v3387_v11 = vld [vmem:[#allocation5 + $0x7e0] ss:$8 sps:$4 sm:$0xff]  }
  0xdb   :  { %2169 = vmatmul.mubr.bf16.vlgmr.msra.gmra.mrb[0].mxu1 %v2650_v12  ;;  %v3392_v12 = vld [vmem:[#allocation5 + $0x2f4] ss:$8 sps:$4 sm:$0xff]  }
  0xdc   :  { %2374 = vmatmul.mubr.bf16.vlgmr.msra.gmra.mrb[0].mxu0 %v2660_v14  ;;  %2178 = vmatpush1.bf16.msra.mxu1 %v3298_v13  ;;  %v3395_v13 = vld [vmem:[#allocation5 + $0x7f4] ss:$8 sps:$4 sm:$0xff]   ;;  %v3390_v14 = vld [vmem:[#allocation5 + $0x2f0] ss:$8 sps:$4 sm:$0xff]  }
  0xdd   :  { %2383 = vmatpush1.bf16.msra.mxu0 %v3303_v15  ;;  %2179 = vmatprep.subr.bf16.mxu1 %v3308_v16  ;;  %v3393_v15 = vld [vmem:[#allocation5 + $0x7f0] ss:$8 sps:$4 sm:$0xff]   ;;  %v3400_v16 = vld [vmem:[#allocation5 + $0x304] ss:$8 sps:$4 sm:$0xff]  }
  0xde   :  { %2384 = vmatprep.subr.bf16.mxu0 %v3311_v17  ;;  %2209 = vmatprep.mubr.bf16.mxu1 %v2653_v19  ;;  %v3405_v17 = vld [vmem:[#allocation5 + $0x804] ss:$8 sps:$4 sm:$0xff]   ;;  %v3398_v19 = vld [vmem:[#allocation5 + $0x300] ss:$8 sps:$4 sm:$0xff]  }
  0xdf   :  { %2414 = vmatprep.mubr.bf16.mxu0 %v2663_v23  ;;  %v2662_v23 = vcombine.low %v3858_v20, %v3858_v20  ;;  %v3409_v20 = vld [vmem:[#allocation5 + $0x810] ss:$8 sps:$4 sm:$0xff]  }
  0xe0   :  { %2180 = vmatpush1.bf16.msra.mxu1 %v3306_v21  ;;  %v3403_v21 = vld [vmem:[#allocation5 + $0x800] ss:$8 sps:$4 sm:$0xff]  }
  0xe1   :  { %2385 = vmatpush1.bf16.msra.mxu0 %v3309_v22  ;;  %2181 = vmatprep.subr.bf16.mxu1 %v3314_v24  ;;  %v2652_v22 = vcombine.low %v3854_v18, %v3854_v18  ;;  %v3866_v24 = vld [vmem:[#allocation2 + $0x18] sm:$0xff]  ;;  %v3406_v18 = vld [vmem:[#allocation5 + $0x310] ss:$8 sps:$4 sm:$0xff]  }
  0xe2   :  { %2386 = vmatprep.subr.bf16.mxu0 %v3317_v25  ;;  %v3868_v25 = vld [vmem:[#allocation2 + $0x40] sm:$0xff] }
  0xe4   :  { %2182 = vmatpush1.bf16.msra.mxu1 %v3312_v26  ;;  %v3408_v26 = vld [vmem:[#allocation5 + $0x314] ss:$8 sps:$4 sm:$0xff]  }
  0xe5   :  { %2387 = vmatpush1.bf16.msra.mxu0 %v3315_v27  ;;  %2183 = vmatprep.subr.bf16.mxu1 %v3320_v28  ;;  %v3411_v27 = vld [vmem:[#allocation5 + $0x814] ss:$8 sps:$4 sm:$0xff]   ;;  %v2655_v28 = vcombine.high %v3866_v24, %v3866_v24 }
  0xe6   :  { %2388 = vmatprep.subr.bf16.mxu0 %v3323_v29  ;;  %v2665_v29 = vcombine.high %v3868_v25, %v3868_v25 }
  0xe8   :  { %2184 = vmatpush1.bf16.msra.mxu1 %v3318_v30  ;;  %v3414_v30 = vld [vmem:[#allocation5 + $0x324] ss:$8 sps:$4 sm:$0xff]  }
  0xe9   :  { %2389 = vmatpush1.bf16.msra.mxu0 %v3321_v31  ;;  %2185 = vmatprep.subr.bf16.mxu1 %v3326_v32  ;;  %v3417_v31 = vld [vmem:[#allocation5 + $0x824] ss:$8 sps:$4 sm:$0xff]   ;;  %v3412_v32 = vld [vmem:[#allocation5 + $0x320] ss:$8 sps:$4 sm:$0xff]  }
  0xea   :  { %2390 = vmatprep.subr.bf16.mxu0 %v3329_v33  ;;  %v3415_v33 = vld [vmem:[#allocation5 + $0x820] ss:$8 sps:$4 sm:$0xff]  }
  0xec   :  { %2186 = vmatpush1.bf16.msra.mxu1 %v3324_v34  ;;  %v3420_v34 = vld [vmem:[#allocation5 + $0x334] ss:$8 sps:$4 sm:$0xff]  }
  0xed   :  { %2391 = vmatpush1.bf16.msra.mxu0 %v3327_v35  ;;  %2187 = vmatprep.subr.bf16.mxu1 %v3332_v36  ;;  %v3423_v35 = vld [vmem:[#allocation5 + $0x834] ss:$8 sps:$4 sm:$0xff]   ;;  %v3418_v36 = vld [vmem:[#allocation5 + $0x330] ss:$8 sps:$4 sm:$0xff]  }
  0xee   :  { %2392 = vmatprep.subr.bf16.mxu0 %v3335_v37  ;;  %v3421_v37 = vld [vmem:[#allocation5 + $0x830] ss:$8 sps:$4 sm:$0xff]  }
  0xf0   :  { %2188 = vmatpush1.bf16.msra.mxu1 %v3330_v38  ;;  %v3426_v38 = vld [vmem:[#allocation5 + $0x344] ss:$8 sps:$4 sm:$0xff]  }
  0xf1   :  { %2393 = vmatpush1.bf16.msra.mxu0 %v3333_v39  ;;  %2189 = vmatprep.subr.bf16.mxu1 %v3338_v40  ;;  %v3429_v39 = vld [vmem:[#allocation5 + $0x844] ss:$8 sps:$4 sm:$0xff]   ;;  %v3424_v40 = vld [vmem:[#allocation5 + $0x340] ss:$8 sps:$4 sm:$0xff]  }
  0xf2   :  { %2394 = vmatprep.subr.bf16.mxu0 %v3341_v41  ;;  %v3427_v41 = vld [vmem:[#allocation5 + $0x840] ss:$8 sps:$4 sm:$0xff]  }
  0xf4   :  { %2190 = vmatpush1.bf16.msra.mxu1 %v3336_v42  ;;  %v3432_v42 = vld [vmem:[#allocation5 + $0x354] ss:$8 sps:$4 sm:$0xff]  }
  0xf5   :  { %2395 = vmatpush1.bf16.msra.mxu0 %v3339_v43  ;;  %2191 = vmatprep.subr.bf16.mxu1 %v3344_v44  ;;  %v3435_v43 = vld [vmem:[#allocation5 + $0x854] ss:$8 sps:$4 sm:$0xff]   ;;  %v3430_v44 = vld [vmem:[#allocation5 + $0x350] ss:$8 sps:$4 sm:$0xff]  }
  0xf6   :  { %2396 = vmatprep.subr.bf16.mxu0 %v3347_v45  ;;  %v3433_v45 = vld [vmem:[#allocation5 + $0x850] ss:$8 sps:$4 sm:$0xff]  }
  0xf8   :  { %2192 = vmatpush1.bf16.msra.mxu1 %v3342_v46  ;;  %v3438_v46 = vld [vmem:[#allocation5 + $0x364] ss:$8 sps:$4 sm:$0xff]  }
  0xf9   :  { %2397 = vmatpush1.bf16.msra.mxu0 %v3345_v47  ;;  %2193 = vmatprep.subr.bf16.mxu1 %v3350_v48  ;;  %v3441_v47 = vld [vmem:[#allocation5 + $0x864] ss:$8 sps:$4 sm:$0xff]   ;;  %v3436_v48 = vld [vmem:[#allocation5 + $0x360] ss:$8 sps:$4 sm:$0xff]  }
  0xfa   :  { %2398 = vmatprep.subr.bf16.mxu0 %v3353_v49  ;;  %v3439_v49 = vld [vmem:[#allocation5 + $0x860] ss:$8 sps:$4 sm:$0xff]  }
  0xfc   :  { %2194 = vmatpush1.bf16.msra.mxu1 %v3348_v50  ;;  %v3444_v50 = vld [vmem:[#allocation5 + $0x374] ss:$8 sps:$4 sm:$0xff]  }
  0xfd   :  { %2399 = vmatpush1.bf16.msra.mxu0 %v3351_v51  ;;  %2195 = vmatprep.subr.bf16.mxu1 %v3356_v52  ;;  %v3447_v51 = vld [vmem:[#allocation5 + $0x874] ss:$8 sps:$4 sm:$0xff]   ;;  %v3442_v52 = vld [vmem:[#allocation5 + $0x370] ss:$8 sps:$4 sm:$0xff]  }
  0xfe   :  { %2400 = vmatprep.subr.bf16.mxu0 %v3359_v53  ;;  %v3445_v53 = vld [vmem:[#allocation5 + $0x870] ss:$8 sps:$4 sm:$0xff]  }
 0x100   :  { %2196 = vmatpush1.bf16.msra.mxu1 %v3354_v54  ;;  %v3450_v54 = vld [vmem:[#allocation5 + $0x384] ss:$8 sps:$4 sm:$0xff]  }
 0x101   :  { %2401 = vmatpush1.bf16.msra.mxu0 %v3357_v55  ;;  %2197 = vmatprep.subr.bf16.mxu1 %v3362_v56  ;;  %v3453_v55 = vld [vmem:[#allocation5 + $0x884] ss:$8 sps:$4 sm:$0xff]   ;;  %v3448_v56 = vld [vmem:[#allocation5 + $0x380] ss:$8 sps:$4 sm:$0xff]  }
 0x102   :  { %2402 = vmatprep.subr.bf16.mxu0 %v3365_v57  ;;  %v3451_v57 = vld [vmem:[#allocation5 + $0x880] ss:$8 sps:$4 sm:$0xff]  }
 0x104   :  { %2198 = vmatpush1.bf16.msra.mxu1 %v3360_v58  ;;  %v3456_v58 = vld [vmem:[#allocation5 + $0x394] ss:$8 sps:$4 sm:$0xff]  }
 0x105   :  { %2403 = vmatpush1.bf16.msra.mxu0 %v3363_v59  ;;  %2199 = vmatprep.subr.bf16.mxu1 %v3368_v60  ;;  %v3459_v59 = vld [vmem:[#allocation5 + $0x894] ss:$8 sps:$4 sm:$0xff]   ;;  %v3454_v60 = vld [vmem:[#allocation5 + $0x390] ss:$8 sps:$4 sm:$0xff]  }
 0x106   :  { %2404 = vmatprep.subr.bf16.mxu0 %v3371_v61  ;;  %v3457_v61 = vld [vmem:[#allocation5 + $0x890] ss:$8 sps:$4 sm:$0xff]  }
 0x108   :  { %2200 = vmatpush1.bf16.msra.mxu1 %v3366_v62  ;;  %v3462_v62 = vld [vmem:[#allocation5 + $0x3a4] ss:$8 sps:$4 sm:$0xff]  }
 0x109   :  { %2405 = vmatpush1.bf16.msra.mxu0 %v3369_v63  ;;  %2201 = vmatprep.subr.bf16.mxu1 %v3374_v0  ;;  %v3465_v63 = vld [vmem:[#allocation5 + $0x8a4] ss:$8 sps:$4 sm:$0xff]   ;;  %v3460_v0 = vld [vmem:[#allocation5 + $0x3a0] ss:$8 sps:$4 sm:$0xff]  }
 0x10a   :  { %2406 = vmatprep.subr.bf16.mxu0 %v3377_v1  ;;  %v3463_v1 = vld [vmem:[#allocation5 + $0x8a0] ss:$8 sps:$4 sm:$0xff]  }
 0x10c   :  { %2202 = vmatpush1.bf16.msra.mxu1 %v3372_v2  ;;  %v3468_v2 = vld [vmem:[#allocation5 + $0x3b4] ss:$8 sps:$4 sm:$0xff]  }
 0x10d   :  { %2407 = vmatpush1.bf16.msra.mxu0 %v3375_v3  ;;  %2203 = vmatprep.subr.bf16.mxu1 %v3380_v4  ;;  %v3471_v3 = vld [vmem:[#allocation5 + $0x8b4] ss:$8 sps:$4 sm:$0xff]   ;;  %v3466_v4 = vld [vmem:[#allocation5 + $0x3b0] ss:$8 sps:$4 sm:$0xff]  }
 0x10e   :  { %2408 = vmatprep.subr.bf16.mxu0 %v3383_v5  ;;  %v3469_v5 = vld [vmem:[#allocation5 + $0x8b0] ss:$8 sps:$4 sm:$0xff]  }
 0x110   :  { %2204 = vmatpush1.bf16.msra.mxu1 %v3378_v6  ;;  %v3474_v6 = vld [vmem:[#allocation5 + $0x3c4] ss:$8 sps:$4 sm:$0xff]  }
 0x111   :  { %2409 = vmatpush1.bf16.msra.mxu0 %v3381_v7  ;;  %2205 = vmatprep.subr.bf16.mxu1 %v3386_v8  ;;  %v3477_v7 = vld [vmem:[#allocation5 + $0x8c4] ss:$8 sps:$4 sm:$0xff]   ;;  %v3472_v8 = vld [vmem:[#allocation5 + $0x3c0] ss:$8 sps:$4 sm:$0xff]  }
 0x112   :  { %2410 = vmatprep.subr.bf16.mxu0 %v3389_v9  ;;  %v3475_v9 = vld [vmem:[#allocation5 + $0x8c0] ss:$8 sps:$4 sm:$0xff]  }
 0x114   :  { %2206 = vmatpush1.bf16.msra.mxu1 %v3384_v10  ;;  %v3480_v10 = vld [vmem:[#allocation5 + $0x3d4] ss:$8 sps:$4 sm:$0xff]  }
 0x115   :  { %2411 = vmatpush1.bf16.msra.mxu0 %v3387_v11  ;;  %2207 = vmatprep.subr.bf16.mxu1 %v3392_v12  ;;  %v3483_v11 = vld [vmem:[#allocation5 + $0x8d4] ss:$8 sps:$4 sm:$0xff]   ;;  %v3478_v12 = vld [vmem:[#allocation5 + $0x3d0] ss:$8 sps:$4 sm:$0xff]  }
 0x116   :  { %2412 = vmatprep.subr.bf16.mxu0 %v3395_v13  ;;  %v3481_v13 = vld [vmem:[#allocation5 + $0x8d0] ss:$8 sps:$4 sm:$0xff]  }
 0x118   :  { %2208 = vmatpush1.bf16.msra.mxu1 %v3390_v14  ;;  %v3486_v14 = vld [vmem:[#allocation5 + $0x3e4] ss:$8 sps:$4 sm:$0xff]  }
 0x119   :  { %2413 = vmatpush1.bf16.msra.mxu0 %v3393_v15  ;;  %2218 = vmatprep.subr.bf16.mxu1 %v3400_v16  ;;  %v3489_v15 = vld [vmem:[#allocation5 + $0x8e4] ss:$8 sps:$4 sm:$0xff]   ;;  %v3484_v16 = vld [vmem:[#allocation5 + $0x3e0] ss:$8 sps:$4 sm:$0xff]  }
 0x11a   :  { %2423 = vmatprep.subr.bf16.mxu0 %v3405_v17  ;;  %v3487_v17 = vld [vmem:[#allocation5 + $0x8e0] ss:$8 sps:$4 sm:$0xff]  }
 0x11b   :  { %2210 = vmatmul.mubr.bf16.vlgmr.msra.gmra.mrb[0].mxu1 %v2652_v22  ;;  %v3490_v22 = vld [vmem:[#allocation5 + $0x3f0] ss:$8 sps:$4 sm:$0xff]  }
 0x11c   :  { %2415 = vmatmul.mubr.bf16.vlgmr.msra.gmra.mrb[0].mxu0 %v2662_v23  ;;  %2219 = vmatpush1.bf16.msra.mxu1 %v3398_v19  ;;  %v3492_v19 = vld [vmem:[#allocation5 + $0x3f4] ss:$8 sps:$4 sm:$0xff]   ;;  %v3493_v23 = vld [vmem:[#allocation5 + $0x8f0] ss:$8 sps:$4 sm:$0xff]  }
 0x11d   :  { %2424 = vmatpush1.bf16.msra.mxu0 %v3403_v21  ;;  %2220 = vmatprep.subr.bf16.mxu1 %v3408_v26  ;;  %v3495_v21 = vld [vmem:[#allocation5 + $0x8f4] ss:$8 sps:$4 sm:$0xff]   ;;  %v3500_v26 = vld [vmem:[#allocation5 + $0x404] ss:$8 sps:$4 sm:$0xff]  }
 0x11e   :  { %2425 = vmatprep.subr.bf16.mxu0 %v3411_v27  ;;  %2250 = vmatprep.mubr.bf16.mxu1 %v2655_v28  ;;  %v3505_v27 = vld [vmem:[#allocation5 + $0x904] ss:$8 sps:$4 sm:$0xff]   ;;  %v2654_v28 = vcombine.low %v3866_v24, %v3866_v24 }
 0x11f   :  { %2455 = vmatprep.mubr.bf16.mxu0 %v2665_v29  ;;  %v2664_v29 = vcombine.low %v3868_v25, %v3868_v25  ;;  %v3506_v25 = vld [vmem:[#allocation5 + $0x410] ss:$8 sps:$4 sm:$0xff]  }
 0x120   :  { %2221 = vmatpush1.bf16.msra.mxu1 %v3406_v18  ;;  %v3878_v18 = vld [vmem:[#allocation2 + $0x20] sm:$0xff] }
 0x121   :  { %2426 = vmatpush1.bf16.msra.mxu0 %v3409_v20  ;;  %2222 = vmatprep.subr.bf16.mxu1 %v3414_v30  ;;  %v3880_v20 = vld [vmem:[#allocation2 + $0x48] sm:$0xff]  ;;  %v3498_v30 = vld [vmem:[#allocation5 + $0x400] ss:$8 sps:$4 sm:$0xff]  }
 0x122   :  { %2427 = vmatprep.subr.bf16.mxu0 %v3417_v31  ;;  %v3503_v31 = vld [vmem:[#allocation5 + $0x900] ss:$8 sps:$4 sm:$0xff]   ;;  %v2667_v24 = vcombine.high %v3880_v20, %v3880_v20 }
 0x124   :  { %2223 = vmatpush1.bf16.msra.mxu1 %v3412_v32  ;;  %v3508_v32 = vld [vmem:[#allocation5 + $0x414] ss:$8 sps:$4 sm:$0xff]  }
 0x125   :  { %2428 = vmatpush1.bf16.msra.mxu0 %v3415_v33  ;;  %2224 = vmatprep.subr.bf16.mxu1 %v3420_v34  ;;  %v3511_v33 = vld [vmem:[#allocation5 + $0x914] ss:$8 sps:$4 sm:$0xff]   ;;  %v2657_v34 = vcombine.high %v3878_v18, %v3878_v18 }
 0x126   :  { %2429 = vmatprep.subr.bf16.mxu0 %v3423_v35  ;;  %v3509_v35 = vld [vmem:[#allocation5 + $0x910] ss:$8 sps:$4 sm:$0xff]  }
 0x128   :  { %2225 = vmatpush1.bf16.msra.mxu1 %v3418_v36  ;;  %v3514_v36 = vld [vmem:[#allocation5 + $0x424] ss:$8 sps:$4 sm:$0xff]  }
 0x129   :  { %2430 = vmatpush1.bf16.msra.mxu0 %v3421_v37  ;;  %2226 = vmatprep.subr.bf16.mxu1 %v3426_v38  ;;  %v3517_v37 = vld [vmem:[#allocation5 + $0x924] ss:$8 sps:$4 sm:$0xff]   ;;  %v3512_v38 = vld [vmem:[#allocation5 + $0x420] ss:$8 sps:$4 sm:$0xff]  }
 0x12a   :  { %2431 = vmatprep.subr.bf16.mxu0 %v3429_v39  ;;  %v3515_v39 = vld [vmem:[#allocation5 + $0x920] ss:$8 sps:$4 sm:$0xff]  }
 0x12c   :  { %2227 = vmatpush1.bf16.msra.mxu1 %v3424_v40  ;;  %v3520_v40 = vld [vmem:[#allocation5 + $0x434] ss:$8 sps:$4 sm:$0xff]  }
 0x12d   :  { %2432 = vmatpush1.bf16.msra.mxu0 %v3427_v41  ;;  %2228 = vmatprep.subr.bf16.mxu1 %v3432_v42  ;;  %v3523_v41 = vld [vmem:[#allocation5 + $0x934] ss:$8 sps:$4 sm:$0xff]   ;;  %v3518_v42 = vld [vmem:[#allocation5 + $0x430] ss:$8 sps:$4 sm:$0xff]  }
 0x12e   :  { %2433 = vmatprep.subr.bf16.mxu0 %v3435_v43  ;;  %v3521_v43 = vld [vmem:[#allocation5 + $0x930] ss:$8 sps:$4 sm:$0xff]  }
 0x130   :  { %2229 = vmatpush1.bf16.msra.mxu1 %v3430_v44  ;;  %v3526_v44 = vld [vmem:[#allocation5 + $0x444] ss:$8 sps:$4 sm:$0xff]  }
 0x131   :  { %2434 = vmatpush1.bf16.msra.mxu0 %v3433_v45  ;;  %2230 = vmatprep.subr.bf16.mxu1 %v3438_v46  ;;  %v3529_v45 = vld [vmem:[#allocation5 + $0x944] ss:$8 sps:$4 sm:$0xff]   ;;  %v3524_v46 = vld [vmem:[#allocation5 + $0x440] ss:$8 sps:$4 sm:$0xff]  }
 0x132   :  { %2435 = vmatprep.subr.bf16.mxu0 %v3441_v47  ;;  %v3527_v47 = vld [vmem:[#allocation5 + $0x940] ss:$8 sps:$4 sm:$0xff]  }
 0x134   :  { %2231 = vmatpush1.bf16.msra.mxu1 %v3436_v48  ;;  %v3532_v48 = vld [vmem:[#allocation5 + $0x454] ss:$8 sps:$4 sm:$0xff]  }
 0x135   :  { %2436 = vmatpush1.bf16.msra.mxu0 %v3439_v49  ;;  %2232 = vmatprep.subr.bf16.mxu1 %v3444_v50  ;;  %v3535_v49 = vld [vmem:[#allocation5 + $0x954] ss:$8 sps:$4 sm:$0xff]   ;;  %v3530_v50 = vld [vmem:[#allocation5 + $0x450] ss:$8 sps:$4 sm:$0xff]  }
 0x136   :  { %2437 = vmatprep.subr.bf16.mxu0 %v3447_v51  ;;  %v3533_v51 = vld [vmem:[#allocation5 + $0x950] ss:$8 sps:$4 sm:$0xff]  }
 0x138   :  { %2233 = vmatpush1.bf16.msra.mxu1 %v3442_v52  ;;  %v3538_v52 = vld [vmem:[#allocation5 + $0x464] ss:$8 sps:$4 sm:$0xff]  }
 0x139   :  { %2438 = vmatpush1.bf16.msra.mxu0 %v3445_v53  ;;  %2234 = vmatprep.subr.bf16.mxu1 %v3450_v54  ;;  %v3541_v53 = vld [vmem:[#allocation5 + $0x964] ss:$8 sps:$4 sm:$0xff]   ;;  %v3536_v54 = vld [vmem:[#allocation5 + $0x460] ss:$8 sps:$4 sm:$0xff]  }
 0x13a   :  { %2439 = vmatprep.subr.bf16.mxu0 %v3453_v55  ;;  %v3539_v55 = vld [vmem:[#allocation5 + $0x960] ss:$8 sps:$4 sm:$0xff]  }
 0x13c   :  { %2235 = vmatpush1.bf16.msra.mxu1 %v3448_v56  ;;  %v3544_v56 = vld [vmem:[#allocation5 + $0x474] ss:$8 sps:$4 sm:$0xff]  }
 0x13d   :  { %2440 = vmatpush1.bf16.msra.mxu0 %v3451_v57  ;;  %2236 = vmatprep.subr.bf16.mxu1 %v3456_v58  ;;  %v3547_v57 = vld [vmem:[#allocation5 + $0x974] ss:$8 sps:$4 sm:$0xff]   ;;  %v3542_v58 = vld [vmem:[#allocation5 + $0x470] ss:$8 sps:$4 sm:$0xff]  }
 0x13e   :  { %2441 = vmatprep.subr.bf16.mxu0 %v3459_v59  ;;  %v3545_v59 = vld [vmem:[#allocation5 + $0x970] ss:$8 sps:$4 sm:$0xff]  }
 0x140   :  { %2237 = vmatpush1.bf16.msra.mxu1 %v3454_v60  ;;  %v3550_v60 = vld [vmem:[#allocation5 + $0x484] ss:$8 sps:$4 sm:$0xff]  }
 0x141   :  { %2442 = vmatpush1.bf16.msra.mxu0 %v3457_v61  ;;  %2238 = vmatprep.subr.bf16.mxu1 %v3462_v62  ;;  %v3553_v61 = vld [vmem:[#allocation5 + $0x984] ss:$8 sps:$4 sm:$0xff]   ;;  %v3548_v62 = vld [vmem:[#allocation5 + $0x480] ss:$8 sps:$4 sm:$0xff]  }
 0x142   :  { %2443 = vmatprep.subr.bf16.mxu0 %v3465_v63  ;;  %v3551_v63 = vld [vmem:[#allocation5 + $0x980] ss:$8 sps:$4 sm:$0xff]  }
 0x144   :  { %2239 = vmatpush1.bf16.msra.mxu1 %v3460_v0  ;;  %v3556_v0 = vld [vmem:[#allocation5 + $0x494] ss:$8 sps:$4 sm:$0xff]  }
 0x145   :  { %2444 = vmatpush1.bf16.msra.mxu0 %v3463_v1  ;;  %2240 = vmatprep.subr.bf16.mxu1 %v3468_v2  ;;  %v3559_v1 = vld [vmem:[#allocation5 + $0x994] ss:$8 sps:$4 sm:$0xff]   ;;  %v3554_v2 = vld [vmem:[#allocation5 + $0x490] ss:$8 sps:$4 sm:$0xff]  }
 0x146   :  { %2445 = vmatprep.subr.bf16.mxu0 %v3471_v3  ;;  %v3557_v3 = vld [vmem:[#allocation5 + $0x990] ss:$8 sps:$4 sm:$0xff]  }
 0x148   :  { %2241 = vmatpush1.bf16.msra.mxu1 %v3466_v4  ;;  %v3562_v4 = vld [vmem:[#allocation5 + $0x4a4] ss:$8 sps:$4 sm:$0xff]  }
 0x149   :  { %2446 = vmatpush1.bf16.msra.mxu0 %v3469_v5  ;;  %2242 = vmatprep.subr.bf16.mxu1 %v3474_v6  ;;  %v3565_v5 = vld [vmem:[#allocation5 + $0x9a4] ss:$8 sps:$4 sm:$0xff]   ;;  %v3560_v6 = vld [vmem:[#allocation5 + $0x4a0] ss:$8 sps:$4 sm:$0xff]  }
 0x14a   :  { %2447 = vmatprep.subr.bf16.mxu0 %v3477_v7  ;;  %v3563_v7 = vld [vmem:[#allocation5 + $0x9a0] ss:$8 sps:$4 sm:$0xff]  }
 0x14c   :  { %2243 = vmatpush1.bf16.msra.mxu1 %v3472_v8  ;;  %v3568_v8 = vld [vmem:[#allocation5 + $0x4b4] ss:$8 sps:$4 sm:$0xff]  }
 0x14d   :  { %2448 = vmatpush1.bf16.msra.mxu0 %v3475_v9  ;;  %2244 = vmatprep.subr.bf16.mxu1 %v3480_v10  ;;  %v3571_v9 = vld [vmem:[#allocation5 + $0x9b4] ss:$8 sps:$4 sm:$0xff]   ;;  %v3566_v10 = vld [vmem:[#allocation5 + $0x4b0] ss:$8 sps:$4 sm:$0xff]  }
 0x14e   :  { %2449 = vmatprep.subr.bf16.mxu0 %v3483_v11  ;;  %v3569_v11 = vld [vmem:[#allocation5 + $0x9b0] ss:$8 sps:$4 sm:$0xff]  }
 0x150   :  { %2245 = vmatpush1.bf16.msra.mxu1 %v3478_v12  ;;  %v3574_v12 = vld [vmem:[#allocation5 + $0x4c4] ss:$8 sps:$4 sm:$0xff]  }
 0x151   :  { %2450 = vmatpush1.bf16.msra.mxu0 %v3481_v13  ;;  %2246 = vmatprep.subr.bf16.mxu1 %v3486_v14  ;;  %v3577_v13 = vld [vmem:[#allocation5 + $0x9c4] ss:$8 sps:$4 sm:$0xff]   ;;  %v3572_v14 = vld [vmem:[#allocation5 + $0x4c0] ss:$8 sps:$4 sm:$0xff]  }
 0x152   :  { %2451 = vmatprep.subr.bf16.mxu0 %v3489_v15  ;;  %v3575_v15 = vld [vmem:[#allocation5 + $0x9c0] ss:$8 sps:$4 sm:$0xff]  }
 0x154   :  { %2247 = vmatpush1.bf16.msra.mxu1 %v3484_v16  ;;  %v3580_v16 = vld [vmem:[#allocation5 + $0x4d4] ss:$8 sps:$4 sm:$0xff]  }
 0x155   :  { %2452 = vmatpush1.bf16.msra.mxu0 %v3487_v17  ;;  %2248 = vmatprep.subr.bf16.mxu1 %v3492_v19  ;;  %v3583_v17 = vld [vmem:[#allocation5 + $0x9d4] ss:$8 sps:$4 sm:$0xff]   ;;  %v3578_v19 = vld [vmem:[#allocation5 + $0x4d0] ss:$8 sps:$4 sm:$0xff]  }
 0x156   :  { %2453 = vmatprep.subr.bf16.mxu0 %v3495_v21  ;;  %v3581_v21 = vld [vmem:[#allocation5 + $0x9d0] ss:$8 sps:$4 sm:$0xff]  }
 0x158   :  { %2249 = vmatpush1.bf16.msra.mxu1 %v3490_v22  ;;  %v3586_v22 = vld [vmem:[#allocation5 + $0x4e4] ss:$8 sps:$4 sm:$0xff]  }
 0x159   :  { %2454 = vmatpush1.bf16.msra.mxu0 %v3493_v23  ;;  %2259 = vmatprep.subr.bf16.mxu1 %v3500_v26  ;;  %v3589_v23 = vld [vmem:[#allocation5 + $0x9e4] ss:$8 sps:$4 sm:$0xff]   ;;  %v3584_v26 = vld [vmem:[#allocation5 + $0x4e0] ss:$8 sps:$4 sm:$0xff]  }
 0x15a   :  { %2464 = vmatprep.subr.bf16.mxu0 %v3505_v27  ;;  %v3587_v27 = vld [vmem:[#allocation5 + $0x9e0] ss:$8 sps:$4 sm:$0xff]  }
 0x15b   :  { %2251 = vmatmul.mubr.bf16.vlgmr.msra.gmra.mrb[0].mxu1 %v2654_v28  ;;  %v3592_v28 = vld [vmem:[#allocation5 + $0x4f4] ss:$8 sps:$4 sm:$0xff]  }
 0x15c   :  { %2456 = vmatmul.mubr.bf16.vlgmr.msra.gmra.mrb[0].mxu0 %v2664_v29  ;;  %2260 = vmatpush1.bf16.msra.mxu1 %v3498_v30  ;;  %v3595_v29 = vld [vmem:[#allocation5 + $0x9f4] ss:$8 sps:$4 sm:$0xff]   ;;  %v2523_v30 = vld [vmem:[#allocation8 + $0x80] sm:$0xff] }
 0x15d   :  { %2465 = vmatpush1.bf16.msra.mxu0 %v3503_v31  ;;  %2261 = vmatprep.subr.bf16.mxu1 %v3508_v32  ;;  %v2524_v31 = vld [vmem:[#allocation8 + $0x88] sm:$0xff] }
 0x15e   :  { %2466 = vmatprep.subr.bf16.mxu0 %v3511_v33  ;;  %2291 = vmatprep.mubr.bf16.mxu1 %v2657_v34  ;;  %v3590_v32 = vld [vmem:[#allocation5 + $0x4f0] ss:$8 sps:$4 sm:$0xff]   ;;  %v3024_v34 = vpack.c.bf16 %v2524_v31, %v2523_v30 }
 0x15f   :  { %2496 = vmatprep.mubr.bf16.mxu0 %v2667_v24  ;;  %v3593_v33 = vld [vmem:[#allocation5 + $0x9f0] ss:$8 sps:$4 sm:$0xff]   ;;  %v2507_v24 = vld [vmem:[#allocation8] sm:$0xff] }
 0x160   :  { %2262 = vmatpush1.bf16.msra.mxu1 %v3506_v25  ;;  %v2508_v25 = vld [vmem:[#allocation8 + $0x8] sm:$0xff] }
 0x161   :  { %2467 = vmatpush1.bf16.msra.mxu0 %v3509_v35  ;;  %2263 = vmatprep.subr.bf16.mxu1 %v3514_v36  ;;  %v2525_v35 = vld [vmem:[#allocation8 + $0x90] sm:$0xff]  ;;  %v2526_v36 = vld [vmem:[#allocation8 + $0x98] sm:$0xff] }
 0x162   :  { %2468 = vmatprep.subr.bf16.mxu0 %v3517_v37  ;;  %v2656_v37 = vcombine.low %v3878_v18, %v3878_v18  ;;  %v2512_v18 = vld [vmem:[#allocation8 + $0x28] sm:$0xff] }
 0x164   :  { %2264 = vmatpush1.bf16.msra.mxu1 %v3512_v38  ;;  %v2666_v38 = vcombine.low %v3880_v20, %v3880_v20 }
 0x165   :  { %2469 = vmatpush1.bf16.msra.mxu0 %v3515_v39  ;;  %2265 = vmatprep.subr.bf16.mxu1 %v3520_v40  ;;  %v3026_v39 = vpack.c.bf16 %v2508_v25, %v2507_v24  ;;  %v3028_v40 = vpack.c.bf16 %v2526_v36, %v2525_v35 }
 0x166   :  { %2470 = vmatprep.subr.bf16.mxu0 %v3523_v41  ;;  %v2509_v41 = vld [vmem:[#allocation8 + $0x10] sm:$0xff] }
 0x168   :  { %2266 = vmatpush1.bf16.msra.mxu1 %v3518_v42  ;;  %v2510_v42 = vld [vmem:[#allocation8 + $0x18] sm:$0xff] }
 0x169   :  { %2471 = vmatpush1.bf16.msra.mxu0 %v3521_v43  ;;  %2267 = vmatprep.subr.bf16.mxu1 %v3526_v44  ;;  %v2527_v43 = vld [vmem:[#allocation8 + $0xa0] sm:$0xff]  ;;  %v2528_v44 = vld [vmem:[#allocation8 + $0xa8] sm:$0xff] }
 0x16a   :  { %2472 = vmatprep.subr.bf16.mxu0 %v3529_v45  ;;  %v3030_v45 = vpack.c.bf16 %v2510_v42, %v2509_v41 }
 0x16c   :  { %2268 = vmatpush1.bf16.msra.mxu1 %v3524_v46  ;;  %v3032_v46 = vpack.c.bf16 %v2528_v44, %v2527_v43 }
 0x16d   :  { %2473 = vmatpush1.bf16.msra.mxu0 %v3527_v47  ;;  %2269 = vmatprep.subr.bf16.mxu1 %v3532_v48  ;;  %v2511_v47 = vld [vmem:[#allocation8 + $0x20] sm:$0xff]  ;;  %v2529_v48 = vld [vmem:[#allocation8 + $0xb0] sm:$0xff] }
 0x16e   :  { %2474 = vmatprep.subr.bf16.mxu0 %v3535_v49  ;;  %v2530_v49 = vld [vmem:[#allocation8 + $0xb8] sm:$0xff]  ;;  %v3034_v20 = vpack.c.bf16 %v2512_v18, %v2511_v47 }
 0x170   :  { %2270 = vmatpush1.bf16.msra.mxu1 %v3530_v50  ;;  %v3036_v50 = vpack.c.bf16 %v2530_v49, %v2529_v48 }
 0x171   :  { %2475 = vmatpush1.bf16.msra.mxu0 %v3533_v51  ;;  %2271 = vmatprep.subr.bf16.mxu1 %v3538_v52  ;;  %v2513_v51 = vld [vmem:[#allocation8 + $0x30] sm:$0xff]  ;;  %v2514_v52 = vld [vmem:[#allocation8 + $0x38] sm:$0xff] }
 0x172   :  { %2476 = vmatprep.subr.bf16.mxu0 %v3541_v53  ;;  %v2531_v53 = vld [vmem:[#allocation8 + $0xc0] sm:$0xff] }
 0x174   :  { %2272 = vmatpush1.bf16.msra.mxu1 %v3536_v54  ;;  %v2532_v54 = vld [vmem:[#allocation8 + $0xc8] sm:$0xff] }
 0x175   :  { %2477 = vmatpush1.bf16.msra.mxu0 %v3539_v55  ;;  %2273 = vmatprep.subr.bf16.mxu1 %v3544_v56  ;;  %v3038_v55 = vpack.c.bf16 %v2514_v52, %v2513_v51  ;;  %v3040_v56 = vpack.c.bf16 %v2532_v54, %v2531_v53 }
 0x176   :  { %2478 = vmatprep.subr.bf16.mxu0 %v3547_v57  ;;  %v2515_v57 = vld [vmem:[#allocation8 + $0x40] sm:$0xff] }
 0x178   :  { %2274 = vmatpush1.bf16.msra.mxu1 %v3542_v58  ;;  %v2516_v58 = vld [vmem:[#allocation8 + $0x48] sm:$0xff] }
 0x179   :  { %2479 = vmatpush1.bf16.msra.mxu0 %v3545_v59  ;;  %2275 = vmatprep.subr.bf16.mxu1 %v3550_v60  ;;  %v2533_v59 = vld [vmem:[#allocation8 + $0xd0] sm:$0xff]  ;;  %v2534_v60 = vld [vmem:[#allocation8 + $0xd8] sm:$0xff] }
 0x17a   :  { %2480 = vmatprep.subr.bf16.mxu0 %v3553_v61  ;;  %v3042_v61 = vpack.c.bf16 %v2516_v58, %v2515_v57 }
 0x17c   :  { %2276 = vmatpush1.bf16.msra.mxu1 %v3548_v62  ;;  %v3044_v62 = vpack.c.bf16 %v2534_v60, %v2533_v59 }
 0x17d   :  { %2481 = vmatpush1.bf16.msra.mxu0 %v3551_v63  ;;  %2277 = vmatprep.subr.bf16.mxu1 %v3556_v0  ;;  %v2517_v63 = vld [vmem:[#allocation8 + $0x50] sm:$0xff]  ;;  %v2518_v0 = vld [vmem:[#allocation8 + $0x58] sm:$0xff] }
 0x17e   :  { %2482 = vmatprep.subr.bf16.mxu0 %v3559_v1  ;;  %v3046_v1 = vpack.c.bf16 %v2518_v0, %v2517_v63 }
 0x180   :  { %2278 = vmatpush1.bf16.msra.mxu1 %v3554_v2  ;;  %v2535_v2 = vld [vmem:[#allocation8 + $0xe0] sm:$0xff] }
 0x181   :  { %2483 = vmatpush1.bf16.msra.mxu0 %v3557_v3  ;;  %2279 = vmatprep.subr.bf16.mxu1 %v3562_v4  ;;  %v2536_v3 = vld [vmem:[#allocation8 + $0xe8] sm:$0xff] }
 0x182   :  { %2484 = vmatprep.subr.bf16.mxu0 %v3565_v5  ;;  %v3048_v4 = vpack.c.bf16 %v2536_v3, %v2535_v2  ;;  %v2519_v5 = vld [vmem:[#allocation8 + $0x60] sm:$0xff] }
 0x184   :  { %2280 = vmatpush1.bf16.msra.mxu1 %v3560_v6  ;;  %v2520_v6 = vld [vmem:[#allocation8 + $0x68] sm:$0xff] }
 0x185   :  { %2485 = vmatpush1.bf16.msra.mxu0 %v3563_v7  ;;  %2281 = vmatprep.subr.bf16.mxu1 %v3568_v8  ;;  %v3050_v7 = vpack.c.bf16 %v2520_v6, %v2519_v5  ;;  %v2537_v8 = vld [vmem:[#allocation8 + $0xf0] sm:$0xff] }
 0x186   :  { %2486 = vmatprep.subr.bf16.mxu0 %v3571_v9  ;;  %v2538_v9 = vld [vmem:[#allocation8 + $0xf8] sm:$0xff] }
 0x188   :  { %2282 = vmatpush1.bf16.msra.mxu1 %v3566_v10  ;;  %v3052_v10 = vpack.c.bf16 %v2538_v9, %v2537_v8 }
 0x189   :  { %2487 = vmatpush1.bf16.msra.mxu0 %v3569_v11  ;;  %2283 = vmatprep.subr.bf16.mxu1 %v3574_v12  ;;  %v2521_v11 = vld [vmem:[#allocation8 + $0x70] sm:$0xff]  ;;  %v2522_v12 = vld [vmem:[#allocation8 + $0x78] sm:$0xff] }
 0x18a   :  { %2488 = vmatprep.subr.bf16.mxu0 %v3577_v13  ;;  %v3054_v13 = vpack.c.bf16 %v2522_v12, %v2521_v11 }
 0x18c   :  { %2284 = vmatpush1.bf16.msra.mxu1 %v3572_v14  ;;  %v415_v14 = vlaneseq }
 0x18d   :  { %2489 = vmatpush1.bf16.msra.mxu0 %v3575_v15  ;;  %2285 = vmatprep.subr.bf16.mxu1 %v3580_v16 }
 0x18e   :  { %2490 = vmatprep.subr.bf16.mxu0 %v3583_v17  ;;  %v416_v15 = vshrl.u32 %v415_v14, 7  ;;  %v413_v17 = vld [vmem:[#allocation7] sm:$0x3] }
 0x190   :  { %2286 = vmatpush1.bf16.msra.mxu1 %v3578_v19  ;;  %v417_v16 = vsub.s32 0, %v416_v15  ;;  %v421_v19 = vsub.s32 1, %v416_v15 }
 0x191   :  { %2491 = vmatpush1.bf16.msra.mxu0 %v3581_v21  ;;  %2287 = vmatprep.subr.bf16.mxu1 %v3586_v22 }
 0x192   :  { %2492 = vmatprep.subr.bf16.mxu0 %v3589_v23  ;;  %v418_v21 = vrot.slane %v413_v17, %v417_v16  ;;  %v422_v22 = vrot.slane %v413_v17, %v421_v19 }
 0x194   :  { %2288 = vmatpush1.bf16.msra.mxu1 %v3584_v26 }
 0x195   :  { %2493 = vmatpush1.bf16.msra.mxu0 %v3587_v27  ;;  %2289 = vmatprep.subr.bf16.mxu1 %v3592_v28 }
 0x196   :  { %2494 = vmatprep.subr.bf16.mxu0 %v3595_v29 }
 0x198   :  { %2290 = vmatpush1.bf16.msra.mxu1 %v3590_v32 }
 0x199   :  { %2495 = vmatpush1.bf16.msra.mxu0 %v3593_v33  ;;  %3025 = vmatprep.subr.bf16.mxu1 %v3024_v34 }
 0x19b   :  { %2292 = vmatmul.mubr.bf16.vlgmr.msra.gmra.mrb[0].mxu1 %v2656_v37  ;;  %v2617_v37 = vand.u32 127, %v415_v14 }
 0x19c   :  { %2497 = vmatmul.mubr.bf16.vlgmr.msra.gmra.mrb[0].mxu0 %v2666_v38  ;;  %3027 = vmatpush3.bf16.msra.mxu1 %v3026_v39 }
 0x19d   :  { %3029 = vmatprep.subr.bf16.mxu1 %v3028_v40  ;;  %v2988_v40 = vld [vmem:[#allocation10] ss:$0 sm:$0xff]  ;;  %vm2618_vm0 = vcmp.lt.s32.totalorder %v2617_v37, 2 }
 0x1a0   :  { %3031 = vmatpush3.bf16.msra.mxu1 %v3030_v45 }
 0x1a1   :  { %3033 = vmatprep.subr.bf16.mxu1 %v3032_v46 }
 0x1a4   :  { %3035 = vmatpush3.bf16.msra.mxu1 %v3034_v20 }
 0x1a5   :  { %3037 = vmatprep.subr.bf16.mxu1 %v3036_v50 }
 0x1a8   :  { %3039 = vmatpush3.bf16.msra.mxu1 %v3038_v55 }
 0x1a9   :  { %3041 = vmatprep.subr.bf16.mxu1 %v3040_v56 }
 0x1ac   :  { %3043 = vmatpush3.bf16.msra.mxu1 %v3042_v61 }
 0x1ad   :  { %3045 = vmatprep.subr.bf16.mxu1 %v3044_v62 }
 0x1b0   :  { %3047 = vmatpush3.bf16.msra.mxu1 %v3046_v1 }
 0x1b1   :  { %3049 = vmatprep.subr.bf16.mxu1 %v3048_v4 }
 0x1b4   :  { %3051 = vmatpush3.bf16.msra.mxu1 %v3050_v7 }
 0x1b5   :  { %3053 = vmatprep.subr.bf16.mxu1 %v3052_v10 }
 0x1b8   :  { %3055 = vmatpush3.bf16.msra.mxu1 %v3054_v13 }
 0x26e   :  { %v2293_v23 = vpop.f32.mrb[0].mxu1 }
 0x26f   :  { %v2498_v26 = vpop.f32.mrb[0].mxu0  ;;  %v3056_v27 = vadd.f32 %v2293_v23, %v418_v21  ;;  %v2295_v28 = vpop.f32.mrb[1].mxu1 }
 0x270   :  { %v2500_v29 = vpop.f32.mrb[1].mxu0  ;;  %v3058_v30 = vadd.f32 %v2295_v28, %v422_v22  ;;  %v2297_v31 = vpop.f32.mrb[2].mxu1 }
 0x271   :  { %v2502_v32 = vpop.f32.mrb[2].mxu0  ;;  %v3057_v33 = vadd.f32 %v3056_v27, %v2498_v26  ;;  %v2298_v34 = vpop.f32.mrb[3].mxu1 }
 0x272   :  { %v2503_v24 = vpop.f32.mrb[3].mxu0  ;;  %v3059_v25 = vadd.f32 %v3058_v30, %v2500_v29 }
 0x273   :  { %v2505_v36 = vmax.f32 %v3057_v33, 0.0 }
 0x274   :  { %v2506_v35 = vmax.f32 %v3059_v25, 0.0 }
 0x276   :  { %2610 = vmatprep.mubr.f32.mxu1 %v2506_v35 }
 0x277   :  { %2611 = vmatmul.mubr.f32.vlgmr.msra.gmra.mrb[4].mxu1 %v2505_v36 }
 0x34a   :  { %v3021_v38 = vpop.f32.mrb[4].mxu1 }
 0x34b   :  { %v3022_v39 = vpop.f32.mrb[5].mxu1 }
 0x34c   :  { %v3023_v41 = vadd.f32 %v3022_v39, %v3021_v38 }
 0x34e   :  { %v2613_v42 = vadd.f32 %v3023_v41, %v2988_v40 }
 0x350   :  { %v2619_v43 = vsel %vm2618_vm0, %v2613_v42, -1e+30 }
 0x351   :  { %2620 = vmax.xlane.f32.xlu0 %v2619_v43 }
 0x3de   :  { %v2621_v44 = vpop.xlane.xlu0 %2620 }
 0x3df   :  { %v2622_v45 = vsub.f32 %v2619_v43, %v2621_v44 }
 0x3e1   :  { %v2623_v46 = vmul.f32 1.442695, %v2622_v45 }
 0x3e3   :  { %3600 = vpow2.f32 %v2623_v46 }
 0x3ed   :  { %v3601_v47 = vpop.eup %3600 }
 0x3ee   :  { %2625 = vadd.xlane.f32.xlu0 %v3601_v47 }
 0x47b   :  { %v2626_v18 = vpop.xlane.xlu0 %2625 }
 0x47c   :  { %3602 = vlog2.f32 %v2626_v18 }
 0x486   :  { %v3603_v48 = vpop.eup %3602 }
 0x487   :  { %v2628_v49 = vmul.f32 0.6931472, %v3603_v48 }
 0x489   :  { %v2629_v20 = vsub.f32 %v2622_v45, %v2628_v49 }
 0x48b   :  { %2630 = vst [vmem:[#allocation11] sm:$0xff] %v2629_v20 }
 0x48c   :  { %3725 = shalt.err (!%p3722_p2)
}
 0x48d   :  { %s3726_s29 = scalar_lea.hbm %s3907_s5, 128 }
 0x48e   :  { %p3727_p3 = scmp.ne.s32.totalorder %s3907_s5, %s3726_s29  ;;  %p3730_p4 = scmp.lt.u32.totalorder %s3726_s29, %s3907_s5 }
 0x490   :  { %p3732_p5 = pnand %p3730_p4, %p3727_p3 }
 0x492   :  { %3735 = shalt.err (!%p3732_p5)
}
 0x493   :  { %2640 = dma.vmem_to_hbm [thread:$0]  %s2638_s26, 128, %s3907_s5, [#allocation4]  }
 0x494   :  { %3742 = dma.done.wait [#allocation4], 128  }
 0x495   :  { %3743 = vsyncadd [#allocation4], 4294967168 }
 0x496   :  { %2644 = vsyncpa [#allocation3], 1 }
 0x497   :  { %2645 = vsyncpa [#allocation6], 1 }
 0x498   :  { %2646 = vsyncpa [#allocation9], 1 }
 0x499   :  { %2647 = vsyncpa [#allocation4], 1 }

</bundles_post_ra>
